<compile_context>
chip_gen: v5e
topology: v5e:2x2
jax: 0.10.0
libtpu: 0.0.40
codegen_flags: <defaults>
</compile_context>

<pallas_src>
import functools
import math

import jax
import jax.numpy as jnp
from jax.experimental import pallas as pl
from jax.experimental.pallas import tpu as pltpu

_LANES = 128
_ACC_ROWS = 64                          # (64, 128) f32 accumulator = 32 KiB, 8 vregs
_TILE_BYTES = 4 * 1024 * 1024           # per input tile (x2 double-buffered)
_VMEM_LIMIT_BYTES = 32 * 1024 * 1024    # within physical VMEM on v5e/v6e/v7x
_FAST_PATH_ELEMS = 64 * 1024            # below this, plain XLA wins on overhead
_SPLIT_MIN_BLOCKS = 4                   # enable 2-way (dual-TC) split only when
                                        # there are >= 4 tiles of work


def _has_two_tensorcores():
    """Best-effort detection of 2-TensorCore chips (v7x). Safe default: False."""
    try:
        kind = jax.devices()[0].device_kind.lower()
    except Exception:  # pragma: no cover - defensive
        return False
    return "v7" in kind


def _jnp_l1_mean(x, label):
    xf = x.astype(jnp.float32)
    diff = jnp.abs(xf) if label == 0.0 else jnp.abs(xf - jnp.float32(label))
    return jnp.mean(diff)


def _l1_sum_kernel(x_ref, out_ref, acc_ref, *, label):
    """Accumulates sum(|x - label|) of (tile_rows, 128) tiles into a (64, 128)
    VMEM accumulator (8 independent vreg add chains -> steady state stays
    DMA-bound); the single cross-lane reduction runs once on the last step of
    the inner (reduction) grid axis.  Outer grid axis = independent row split.

    NOTE: out_ref is only written on the last inner step.  This is safe because
    the output block index is constant along the reduction axis, so writeback
    to HBM only happens after that last step.  Do not change the grid order or
    out_spec without revisiting this.
    """
    i = pl.program_id(1)

    @pl.when(i == 0)
    def _():
        acc_ref[...] = jnp.zeros_like(acc_ref)

    x = x_ref[...].astype(jnp.float32)
    diff = jnp.abs(x) if label == 0.0 else jnp.abs(x - jnp.float32(label))
    # (tile_rows, 128) -> (tile_rows//64, 64, 128); summing the leading axis is
    # pure elementwise vreg adds with 8-way ILP — no per-step XLU reduction.
    acc_ref[...] += diff.reshape(-1, _ACC_ROWS, _LANES).sum(axis=0)

    @pl.when(i == pl.num_programs(1) - 1)
    def _():
        out_ref[0, 0] = jnp.sum(acc_ref[...])


def gan_loss(d_last_layer, is_d_input_real, *,
             tile_bytes=_TILE_BYTES, fast_path_elems=_FAST_PATH_ELEMS):
    """JAX/Pallas equivalent of GANLoss.forward.

    d_last_layer    : NCHW array (canonically [1, 1, S, S]) in any float dtype.
    is_d_input_real : Python bool — selects the all-ones vs all-zeros label map.
    Returns         : scalar f32 mean L1 loss.
    """
    label = 1.0 if is_d_input_real else 0.0
    total = math.prod(d_last_layer.shape)
    dtype = d_last_layer.dtype
    itemsize = jnp.dtype(dtype).itemsize
    inv_n = 1.0 / float(total)

    rows_full = total // _LANES

    # ---- fast path ----
    # Tiny maps (incl. the real 16x16 GANLoss shape) are overhead-dominated, and
    # lane-ragged maps (total % 128 != 0) would need a relayout copy to become
    # lane-dense; for both, a fused XLA streaming reduction is already at the
    # HBM roofline, so just use it — no padding copy anywhere.
    if total < fast_path_elems or total % _LANES != 0 or rows_full < _ACC_ROWS:
        return _jnp_l1_mean(d_last_layer, label)

    # ---- lane-dense tiling: free reshape to a (rows_full, 128) slab ----
    x2d = d_last_layer.reshape(rows_full, _LANES)

    cap_rows = max(
        _ACC_ROWS,
        (tile_bytes // (_LANES * itemsize)) // _ACC_ROWS * _ACC_ROWS)
    tile_rows = min(cap_rows, (rows_full // _ACC_ROWS) * _ACC_ROWS)
    blocks_total = rows_full // tile_rows

    # Dual-TC (v7x) split of the block range; only when the split is exact and
    # there is enough work.  On 1-TC chips this stays 1 (zero extra overhead).
    two_tc = _has_two_tensorcores()
    num_splits = 2 if (two_tc and blocks_total >= _SPLIT_MIN_BLOCKS
                       and blocks_total % 2 == 0) else 1
    steps = blocks_total // num_splits

    rows_main = blocks_total * tile_rows            # tile-aligned prefix
    tail_rows = rows_full - rows_main               # < tile_rows

    kernel = functools.partial(_l1_sum_kernel, label=label)

    partials = pl.pallas_call(
        kernel,
        out_shape=jax.ShapeDtypeStruct((num_splits, 1), jnp.float32),
        grid=(num_splits, steps),
        in_specs=[pl.BlockSpec((tile_rows, _LANES),
                               lambda c, i, s=steps: (c * s + i, 0))],
        out_specs=pl.BlockSpec((1, 1), lambda c, i: (c, 0),
                               memory_space=pltpu.SMEM),
        scratch_shapes=[pltpu.VMEM((_ACC_ROWS, _LANES), jnp.float32)],
        compiler_params=pltpu.CompilerParams(
            dimension_semantics=("parallel", "arbitrary"),
            vmem_limit_bytes=_VMEM_LIMIT_BYTES),
        cost_estimate=pl.CostEstimate(
            flops=3 * rows_main * _LANES,
            transcendentals=0,
            bytes_accessed=rows_main * _LANES * itemsize + num_splits * 4),
    )(x2d)

    loss_sum = jnp.sum(partials)

    if tail_rows:
        # Ragged row tail (< one tile): fused XLA reduce over just those rows
        # (read-only; no padding copy of the full array).
        tail = x2d[rows_main:].astype(jnp.float32)
        tail_diff = jnp.abs(tail) if label == 0.0 else jnp.abs(tail - jnp.float32(label))
        loss_sum = loss_sum + jnp.sum(tail_diff)

    return loss_sum * jnp.float32(inv_n)


def _ref(x, is_real):
    label = 1.0 if is_real else 0.0
    return jnp.mean(jnp.abs(x.astype(jnp.float32) - label))


if __name__ == "__main__":
    key = jax.random.PRNGKey(0)
    k0, k1, k2, k3, k4 = jax.random.split(key, 5)

    # Real GANLoss shape: [1, 1, d_last_layer_size, d_last_layer_size] -> fast path.
    d_last_layer_size = 16
    d_small = jax.random.uniform(
        k0, (1, 1, d_last_layer_size, d_last_layer_size), dtype=jnp.float32)
    loss_real = jax.block_until_ready(gan_loss(d_small, True))
    loss_fake = jax.block_until_ready(gan_loss(d_small, False))
    assert jnp.allclose(loss_real, _ref(d_small, True), atol=1e-6)
    assert jnp.allclose(loss_fake, _ref(d_small, False), atol=1e-6)

    # Large map -> Pallas kernel path (single big tile, default settings).
    d_big = jax.random.uniform(k1, (1, 1, 512, 512), dtype=jnp.float32)
    out_big = jax.block_until_ready(gan_loss(d_big, True))
    assert jnp.allclose(out_big, _ref(d_big, True), atol=1e-6)

    # Multi-step, row-tail and bf16 kernel paths, exercised by shrinking the
    # per-tile budget / fast-path threshold.
    tiny_tile = _ACC_ROWS * _LANES * 4                  # one (64,128) f32 tile
    d_multi = jax.random.uniform(k2, (1, 1, 128, 256), dtype=jnp.float32)  # 256 rows -> 4 tiles
    d_tail = jax.random.uniform(k3, (1, 1, 96, 96), dtype=jnp.float32)     # 72 rows -> 1 tile + 8-row tail
    d_bf16 = jax.random.uniform(k4, (1, 1, 256, 256)).astype(jnp.bfloat16)

    out_m = jax.block_until_ready(
        gan_loss(d_multi, False, tile_bytes=tiny_tile, fast_path_elems=0))
    out_t = jax.block_until_ready(
        gan_loss(d_tail, True, tile_bytes=tiny_tile, fast_path_elems=0))
    out_b = jax.block_until_ready(gan_loss(d_bf16, True))
    assert jnp.allclose(out_m, _ref(d_multi, False), atol=1e-6)
    assert jnp.allclose(out_t, _ref(d_tail, True), atol=1e-6)
    assert jnp.allclose(out_b, _ref(d_bf16, True), atol=1e-5)

    # Ragged-lane (total % 128 != 0) shapes route to the XLA fast path.
    d_ragged = jax.random.uniform(key, (1, 1, 40, 40), dtype=jnp.float32)
    out_r = jax.block_until_ready(gan_loss(d_ragged, False, fast_path_elems=0))
    assert jnp.allclose(out_r, _ref(d_ragged, False), atol=1e-6)

    print("KERNEL_OK")
</pallas_src>

<mosaic_0001>
module attributes {stable_mosaic.version = 11 : i64} {
  func.func @_l1_sum_kernel(%arg0: i32, %arg1: i32, %arg2: memref<2048x128xf32, #tpu.memory_space<vmem>>, %arg3: memref<1x1xf32, #tpu.memory_space<smem>>, %arg4: memref<64x128xf32, #tpu.memory_space<vmem>>) attributes {dimension_semantics = [#tpu.dimension_semantics<parallel>, #tpu.dimension_semantics<arbitrary>], iteration_bounds = array<i64: 1, 1>, scalar_prefetch = 0 : i64, scratch_operands = 1 : i64, tpu.core_type = #tpu.core_type<tc>, window_params = [{transform_indices = @transform_0, window_bounds = array<i64: 2048, 128>}, {transform_indices = @transform_1, window_bounds = array<i64: 1, 1>}]} {
    %c0_i32 = arith.constant 0 : i32
    %0 = arith.cmpi eq, %arg1, %c0_i32 : i32
    %1 = arith.extui %0 : i1 to i32
    %c0_i32_0 = arith.constant 0 : i32
    %2 = arith.cmpi ne, %1, %c0_i32_0 : i32
    scf.if %2 {
      %cst_9 = arith.constant 0.000000e+00 : f32
      %15 = vector.broadcast %cst_9 : f32 to vector<64x128xf32>
      %c0_10 = arith.constant 0 : index
      %c0_11 = arith.constant 0 : index
      %16 = vector.load %arg4[%c0_10, %c0_11] : memref<64x128xf32, #tpu.memory_space<vmem>>, vector<64x128xf32>
      tpu.vector_store %arg4[%c0_10, %c0_11], %15 {strides = array<i32>} : memref<64x128xf32, #tpu.memory_space<vmem>>, vector<64x128xf32>,
    } else {
    }
    %c0 = arith.constant 0 : index
    %c0_1 = arith.constant 0 : index
    %3 = vector.load %arg2[%c0, %c0_1] : memref<2048x128xf32, #tpu.memory_space<vmem>>, vector<2048x128xf32>
    %cst = arith.constant 1.000000e+00 : f32
    %4 = vector.broadcast %cst : f32 to vector<2048x128xf32>
    %5 = arith.subf %3, %4 : vector<2048x128xf32>
    %6 = math.absf %5 : vector<2048x128xf32>
    %c0_2 = arith.constant 0 : index
    %c0_3 = arith.constant 0 : index
    %7 = vector.load %arg4[%c0_2, %c0_3] : memref<64x128xf32, #tpu.memory_space<vmem>>, vector<64x128xf32>
    %8 = vector.shape_cast %6 : vector<2048x128xf32> to vector<32x64x128xf32>
    %cst_4 = arith.constant dense<0.000000e+00> : vector<64x128xf32>
    %9 = vector.multi_reduction <add>, %8, %cst_4 [0] : vector<32x64x128xf32> to vector<64x128xf32>
    %10 = arith.addf %7, %9 : vector<64x128xf32>
    %c0_5 = arith.constant 0 : index
    %c0_6 = arith.constant 0 : index
    %11 = vector.load %arg4[%c0_5, %c0_6] : memref<64x128xf32, #tpu.memory_space<vmem>>, vector<64x128xf32>
    tpu.vector_store %arg4[%c0_5, %c0_6], %10 {strides = array<i32>} : memref<64x128xf32, #tpu.memory_space<vmem>>, vector<64x128xf32>,
    %c0_i32_7 = arith.constant 0 : i32
    %12 = arith.cmpi eq, %arg1, %c0_i32_7 : i32
    %13 = arith.extui %12 : i1 to i32
    %c0_i32_8 = arith.constant 0 : i32
    %14 = arith.cmpi ne, %13, %c0_i32_8 : i32
    scf.if %14 {
      %c0_9 = arith.constant 0 : index
      %c0_10 = arith.constant 0 : index
      %15 = vector.load %arg4[%c0_9, %c0_10] : memref<64x128xf32, #tpu.memory_space<vmem>>, vector<64x128xf32>
      %16 = vector.shape_cast %15 : vector<64x128xf32> to vector<1x64x128xf32>
      %cst_11 = arith.constant dense<0.000000e+00> : vector<1xf32>
      %17 = vector.multi_reduction <add>, %16, %cst_11 [1, 2] : vector<1x64x128xf32> to vector<1xf32>
      %18 = vector.shape_cast %17 : vector<1xf32> to vector<1x1x1xf32>
      %19 = vector.extract %18[0, 0, 0] : f32 from vector<1x1x1xf32>
      %c0_12 = arith.constant 0 : index
      %c0_13 = arith.constant 0 : index
      %20 = memref.load %arg3[%c0_12, %c0_13] : memref<1x1xf32, #tpu.memory_space<smem>>
      memref.store %19, %arg3[%c0_12, %c0_13] : memref<1x1xf32, #tpu.memory_space<smem>>
    } else {
    }
    return
  }
  func.func @transform_0(%arg0: i32, %arg1: i32) -> (i32, i32) {
    %c1_i32 = arith.constant 1 : i32
    %0 = arith.muli %arg0, %c1_i32 : i32
    %1 = arith.addi %0, %arg1 : i32
    %c0_i32 = arith.constant 0 : i32
    %c0_i32_0 = arith.constant 0 : i32
    return %1, %c0_i32 : i32, i32
  }
  func.func @transform_1(%arg0: i32, %arg1: i32) -> (i32, i32) {
    %c0_i32 = arith.constant 0 : i32
    %c0_i32_0 = arith.constant 0 : i32
    return %arg0, %c0_i32 : i32, i32
  }
}

</mosaic_0001>

<bundles_post_ra>
// kernel: tpu_custom_call.1
= control target key start
LH: loop header
LB: loop body
LE: loop exit
PB: predicated region body
PF: predicated region fallthrough
CT: control target
= control target key end

     0   :  { %6 = vsyncpa [#allocation4], 0  ;;  %s2530_s0 = inlined_call_operand.hbm [shape: f32[2048,128], index: 0, kind: input, shape index: {}]   ;;  %s2531_s1 = inlined_call_operand.hbm [shape: f32[1,1], index: 1, kind: output, shape index: {}]  }
   0x1   :  { %7 = vsyncpa [#allocation5], 0  ;;  %s16_s8 = sshll.u32 %s2530_s0, 4  ;;  %s1430_s9 = smov [#allocation3]   ;;  %s17_s8 = int_to_ptr.hbm [resolvable:$true] %s16_s8 }
   0x2   :  { %s18_s10 = sshll.u32 %s1430_s9, 4  ;;  %s1431_s11 = smov 128   ;;  %s19_s10 = int_to_ptr.vmem [resolvable:$true] %s18_s10 }
   0x3   :  { %s1432_s12 = smov 8  }
   0x4   :  { %24 = dma.hbm_to_vmem [thread:$0]  %s17_s8, 32768, %s19_s10, [#allocation4], %s1431_s11, %s1431_s11, %s1432_s12  }
   0x5   :  { %1426 = dma.done.wait [#allocation4], 32768  }
   0x6   :  { %1427 = vsyncadd [#allocation4], 4294934528  ;;  %v43_v0 = vld [vmem:[#allocation3] sm:$0xff]  ;;  %v44_v1 = vld [vmem:[#allocation3 + $0x8] sm:$0xff]  ;;  %s1117_s14 = sshll.u32 %s2531_s1, 4  ;;  %s1433_s16 = smov [#allocation6]   ;;  %s1118_s14 = int_to_ptr.hbm [resolvable:$true] %s1117_s14 }
   0x7   :  { %v45_v2 = vld [vmem:[#allocation3 + $0x10] sm:$0xff]  ;;  %v46_v3 = vld [vmem:[#allocation3 + $0x18] sm:$0xff]  ;;  %v47_v4 = vld [vmem:[#allocation3 + $0x20] sm:$0xff]  ;;  %v1447_v15 = vadd.f32 -1.0, %v43_v0  ;;  %v1449_v16 = vadd.f32 -1.0, %v44_v1 }
   0x8   :  { %v48_v5 = vld [vmem:[#allocation3 + $0x28] sm:$0xff]  ;;  %v49_v6 = vld [vmem:[#allocation3 + $0x30] sm:$0xff]  ;;  %v50_v7 = vld [vmem:[#allocation3 + $0x38] sm:$0xff]  ;;  %v1451_v17 = vadd.f32 -1.0, %v45_v2  ;;  %v1453_v21 = vadd.f32 -1.0, %v46_v3  ;;  %v1455_v22 = vadd.f32 -1.0, %v47_v4 }
   0x9   :  { %v51_v8 = vld [vmem:[#allocation3 + $0x40] sm:$0xff]  ;;  %v52_v9 = vld [vmem:[#allocation3 + $0x48] sm:$0xff]  ;;  %v53_v10 = vld [vmem:[#allocation3 + $0x50] sm:$0xff]  ;;  %v1457_v23 = vadd.f32 -1.0, %v48_v5  ;;  %v1459_v27 = vadd.f32 -1.0, %v49_v6  ;;  %v1461_v28 = vadd.f32 -1.0, %v50_v7 }
   0xa   :  { %v54_v11 = vld [vmem:[#allocation3 + $0x58] sm:$0xff]  ;;  %v55_v12 = vld [vmem:[#allocation3 + $0x60] sm:$0xff]  ;;  %v56_v13 = vld [vmem:[#allocation3 + $0x68] sm:$0xff]  ;;  %v1463_v29 = vadd.f32 -1.0, %v51_v8  ;;  %v1465_v33 = vadd.f32 -1.0, %v52_v9  ;;  %v1467_v34 = vadd.f32 -1.0, %v53_v10 }
   0xb   :  { %v57_v14 = vld [vmem:[#allocation3 + $0x70] sm:$0xff]  ;;  %v58_v18 = vld [vmem:[#allocation3 + $0x78] sm:$0xff]  ;;  %v59_v19 = vld [vmem:[#allocation3 + $0x80] sm:$0xff]  ;;  %v1469_v35 = vadd.f32 -1.0, %v54_v11  ;;  %v1471_v39 = vadd.f32 -1.0, %v55_v12  ;;  %v1473_v40 = vadd.f32 -1.0, %v56_v13 }
   0xc   :  { %v60_v20 = vld [vmem:[#allocation3 + $0x88] sm:$0xff]  ;;  %v61_v24 = vld [vmem:[#allocation3 + $0x90] sm:$0xff]  ;;  %v62_v25 = vld [vmem:[#allocation3 + $0x98] sm:$0xff]  ;;  %v1475_v41 = vadd.f32 -1.0, %v57_v14  ;;  %v1477_v45 = vadd.f32 -1.0, %v58_v18  ;;  %v1479_v46 = vadd.f32 -1.0, %v59_v19 }
   0xd   :  { %v63_v26 = vld [vmem:[#allocation3 + $0xa0] sm:$0xff]  ;;  %v64_v30 = vld [vmem:[#allocation3 + $0xa8] sm:$0xff]  ;;  %v65_v31 = vld [vmem:[#allocation3 + $0xb0] sm:$0xff]  ;;  %v1481_v47 = vadd.f32 -1.0, %v60_v20  ;;  %v1483_v51 = vadd.f32 -1.0, %v61_v24  ;;  %v1485_v52 = vadd.f32 -1.0, %v62_v25 }
   0xe   :  { %v66_v32 = vld [vmem:[#allocation3 + $0xb8] sm:$0xff]  ;;  %v67_v36 = vld [vmem:[#allocation3 + $0xc0] sm:$0xff]  ;;  %v68_v37 = vld [vmem:[#allocation3 + $0xc8] sm:$0xff]  ;;  %2676 = vst [vmem:[#allocation9_spill] sm:$0xff] %v1475_v41  ;;  %v1487_v53 = vadd.f32 -1.0, %v63_v26  ;;  %v1489_v57 = vadd.f32 -1.0, %v64_v30 }
   0xf   :  { %v69_v38 = vld [vmem:[#allocation3 + $0xd0] sm:$0xff]  ;;  %v70_v42 = vld [vmem:[#allocation3 + $0xd8] sm:$0xff]  ;;  %v71_v43 = vld [vmem:[#allocation3 + $0xe0] sm:$0xff]  ;;  %2677 = vst [vmem:[#allocation10_spill] sm:$0xff] %v1477_v45  ;;  %v1491_v58 = vadd.f32 -1.0, %v65_v31  ;;  %v1493_v59 = vadd.f32 -1.0, %v66_v32 }
  0x10   :  { %v72_v44 = vld [vmem:[#allocation3 + $0xe8] sm:$0xff]  ;;  %v73_v48 = vld [vmem:[#allocation3 + $0xf0] sm:$0xff]  ;;  %v74_v49 = vld [vmem:[#allocation3 + $0xf8] sm:$0xff]  ;;  %2678 = vst [vmem:[#allocation11_spill] sm:$0xff] %v1485_v52  ;;  %v1495_v63 = vadd.f32 -1.0, %v67_v36  ;;  %v1497_v0 = vadd.f32 -1.0, %v68_v37 }
  0x11   :  { %v75_v50 = vld [vmem:[#allocation3 + $0x100] sm:$0xff]  ;;  %2679 = vst [vmem:[#allocation12_spill] sm:$0xff] %v1487_v53  ;;  %v76_v54 = vld [vmem:[#allocation3 + $0x108] sm:$0xff]  ;;  %v77_v55 = vld [vmem:[#allocation3 + $0x110] sm:$0xff]  ;;  %v1499_v1 = vadd.f32 -1.0, %v69_v38  ;;  %v1501_v5 = vadd.f32 -1.0, %v70_v42 }
  0x12   :  { %v78_v56 = vld [vmem:[#allocation3 + $0x118] sm:$0xff]  ;;  %2680 = vst [vmem:[#allocation13_spill] sm:$0xff] %v1489_v57  ;;  %v79_v60 = vld [vmem:[#allocation3 + $0x120] sm:$0xff]  ;;  %v80_v61 = vld [vmem:[#allocation3 + $0x128] sm:$0xff]  ;;  %v1503_v6 = vadd.f32 -1.0, %v71_v43  ;;  %v1505_v7 = vadd.f32 -1.0, %v72_v44 }
  0x13   :  { %2681 = vst [vmem:[#allocation14_spill] sm:$0xff] %v1491_v58  ;;  %v81_v62 = vld [vmem:[#allocation3 + $0x130] sm:$0xff]  ;;  %v82_v2 = vld [vmem:[#allocation3 + $0x138] sm:$0xff]  ;;  %v83_v3 = vld [vmem:[#allocation3 + $0x140] sm:$0xff]  ;;  %v1507_v11 = vadd.f32 -1.0, %v73_v48  ;;  %v1509_v12 = vadd.f32 -1.0, %v74_v49 }
  0x14   :  { %2682 = vst [vmem:[#allocation15_spill] sm:$0xff] %v1493_v59  ;;  %v84_v4 = vld [vmem:[#allocation3 + $0x148] sm:$0xff]  ;;  %v85_v8 = vld [vmem:[#allocation3 + $0x150] sm:$0xff]  ;;  %v86_v9 = vld [vmem:[#allocation3 + $0x158] sm:$0xff]  ;;  %v1511_v13 = vadd.f32 -1.0, %v75_v50  ;;  %v1513_v20 = vadd.f32 -1.0, %v76_v54 }
  0x15   :  { %2683 = vst [vmem:[#allocation16_spill] sm:$0xff] %v1501_v5  ;;  %v87_v10 = vld [vmem:[#allocation3 + $0x160] sm:$0xff]  ;;  %v88_v14 = vld [vmem:[#allocation3 + $0x168] sm:$0xff]  ;;  %v89_v18 = vld [vmem:[#allocation3 + $0x170] sm:$0xff]  ;;  %v1515_v24 = vadd.f32 -1.0, %v77_v55  ;;  %v1517_v25 = vadd.f32 -1.0, %v78_v56 }
  0x16   :  { %2684 = vst [vmem:[#allocation17_spill] sm:$0xff] %v1503_v6  ;;  %v90_v19 = vld [vmem:[#allocation3 + $0x178] sm:$0xff]  ;;  %v91_v26 = vld [vmem:[#allocation3 + $0x180] sm:$0xff]  ;;  %v92_v30 = vld [vmem:[#allocation3 + $0x188] sm:$0xff]  ;;  %v1519_v32 = vadd.f32 -1.0, %v79_v60  ;;  %v1521_v36 = vadd.f32 -1.0, %v80_v61 }
  0x17   :  { %2685 = vst [vmem:[#allocation18_spill] sm:$0xff] %v1505_v7  ;;  %v93_v31 = vld [vmem:[#allocation3 + $0x190] sm:$0xff]  ;;  %v1523_v37 = vadd.f32 -1.0, %v81_v62  ;;  %v94_v38 = vld [vmem:[#allocation3 + $0x198] sm:$0xff]  ;;  %v95_v42 = vld [vmem:[#allocation3 + $0x1a0] sm:$0xff]  ;;  %v1525_v44 = vadd.f32 -1.0, %v82_v2 }
  0x18   :  { %2686 = vst [vmem:[#allocation19_spill] sm:$0xff] %v1507_v11  ;;  %v96_v43 = vld [vmem:[#allocation3 + $0x1a8] sm:$0xff]  ;;  %v1527_v48 = vadd.f32 -1.0, %v83_v3  ;;  %v1529_v49 = vadd.f32 -1.0, %v84_v4  ;;  %v97_v50 = vld [vmem:[#allocation3 + $0x1b0] sm:$0xff]  ;;  %v98_v54 = vld [vmem:[#allocation3 + $0x1b8] sm:$0xff] }
  0x19   :  { %2687 = vst [vmem:[#allocation20_spill] sm:$0xff] %v1509_v12  ;;  %v99_v55 = vld [vmem:[#allocation3 + $0x1c0] sm:$0xff]  ;;  %v1531_v56 = vadd.f32 -1.0, %v85_v8  ;;  %v1533_v60 = vadd.f32 -1.0, %v86_v9  ;;  %v1535_v61 = vadd.f32 -1.0, %v87_v10  ;;  %v100_v62 = vld [vmem:[#allocation3 + $0x1c8] sm:$0xff] }
  0x1a   :  { %2688 = vst [vmem:[#allocation21_spill] sm:$0xff] %v1517_v25  ;;  %v1539_v2 = vadd.f32 -1.0, %v89_v18  ;;  %v1541_v3 = vadd.f32 -1.0, %v90_v19  ;;  %v103_v4 = vld [vmem:[#allocation3 + $0x1e0] sm:$0xff]  ;;  %v105_v25 = vld [vmem:[#allocation3 + $0x1f0] sm:$0xff]  ;;  %v1543_v12 = vadd.f32 -1.0, %v91_v26 }
  0x1b   :  { %2689 = vst [vmem:[#allocation22_spill] sm:$0xff] %v1519_v32  ;;  %v1537_v32 = vadd.f32 -1.0, %v88_v14  ;;  %v1545_v8 = vadd.f32 -1.0, %v92_v30  ;;  %v1547_v9 = vadd.f32 -1.0, %v93_v31  ;;  %v106_v10 = vld [vmem:[#allocation3 + $0x1f8] sm:$0xff]  ;;  %v1549_v11 = vadd.f32 -1.0, %v94_v38 }
  0x1c   :  { %2690 = vst [vmem:[#allocation23_spill] sm:$0xff] %v1521_v36  ;;  %v102_v36 = vld [vmem:[#allocation3 + $0x1d8] sm:$0xff]  ;;  %v1551_v14 = vadd.f32 -1.0, %v95_v42  ;;  %v1553_v18 = vadd.f32 -1.0, %v96_v43  ;;  %v109_v19 = vld [vmem:[#allocation3 + $0x210] sm:$0xff]  ;;  %v1557_v26 = vadd.f32 -1.0, %v98_v54 }
  0x1d   :  { %2691 = vst [vmem:[#allocation24_spill] sm:$0xff] %v1523_v37  ;;  %v101_v37 = vld [vmem:[#allocation3 + $0x1d0] sm:$0xff]  ;;  %v1559_v30 = vadd.f32 -1.0, %v99_v55  ;;  %v112_v31 = vld [vmem:[#allocation3 + $0x228] sm:$0xff]  ;;  %v1561_v6 = vadd.f32 -1.0, %v100_v62  ;;  %v1565_v42 = vadd.f32 -1.0, %v102_v36 }
  0x1e   :  { %2692 = vst [vmem:[#allocation25_spill] sm:$0xff] %v1525_v44  ;;  %v104_v44 = vld [vmem:[#allocation3 + $0x1e8] sm:$0xff]  ;;  %v113_v7 = vld [vmem:[#allocation3 + $0x230] sm:$0xff]  ;;  %v1563_v38 = vadd.f32 -1.0, %v101_v37  ;;  %v115_v43 = vld [vmem:[#allocation3 + $0x240] sm:$0xff]  ;;  %v1571_v54 = vadd.f32 -1.0, %v105_v25 }
  0x1f   :  { %2693 = vst [vmem:[#allocation26_spill] sm:$0xff] %v1533_v60  ;;  %v108_v60 = vld [vmem:[#allocation3 + $0x208] sm:$0xff]  ;;  %v118_v55 = vld [vmem:[#allocation3 + $0x258] sm:$0xff]  ;;  %v1573_v5 = vadd.f32 -1.0, %v106_v10  ;;  %v121_v36 = vld [vmem:[#allocation3 + $0x270] sm:$0xff]  ;;  %v1579_v59 = vadd.f32 -1.0, %v109_v19 }
  0x20   :  { %2694 = vst [vmem:[#allocation27_spill] sm:$0xff] %v1535_v61  ;;  %v107_v61 = vld [vmem:[#allocation3 + $0x200] sm:$0xff]  ;;  %v1577_v37 = vadd.f32 -1.0, %v108_v60  ;;  %v124_v25 = vld [vmem:[#allocation3 + $0x288] sm:$0xff]  ;;  %v1587_v10 = vadd.f32 -1.0, %v113_v7  ;;  %v129_v58 = vld [vmem:[#allocation3 + $0x2b0] sm:$0xff] }
  0x21   :  { %2695 = vst [vmem:[#allocation28_spill] sm:$0xff] %v1537_v32  ;;  %v1555_v32 = vadd.f32 -1.0, %v97_v50  ;;  %v1569_v50 = vadd.f32 -1.0, %v104_v44  ;;  %v1575_v62 = vadd.f32 -1.0, %v107_v61  ;;  %v127_v60 = vld [vmem:[#allocation3 + $0x2a0] sm:$0xff]  ;;  %v1591_v57 = vadd.f32 -1.0, %v115_v43 }
  0x22   :  { %2696 = vst [vmem:[#allocation29_spill] sm:$0xff] %v1539_v2  ;;  %v111_v2 = vld [vmem:[#allocation3 + $0x220] sm:$0xff]  ;;  %v138_v53 = vld [vmem:[#allocation3 + $0x2f8] sm:$0xff]  ;;  %v1609_v52 = vadd.f32 -1.0, %v124_v25 }
  0x23   :  { %2697 = vst [vmem:[#allocation30_spill] sm:$0xff] %v1541_v3  ;;  %v110_v3 = vld [vmem:[#allocation3 + $0x218] sm:$0xff]  ;;  %v1583_v44 = vadd.f32 -1.0, %v111_v2 }
  0x24   :  { %2698 = vst [vmem:[#allocation31_spill] sm:$0xff] %v1547_v9  ;;  %v114_v9 = vld [vmem:[#allocation3 + $0x238] sm:$0xff] }
  0x25   :  { %2699 = vst [vmem:[#allocation32_spill] sm:$0xff] %v1549_v11  ;;  %v1567_v11 = vadd.f32 -1.0, %v103_v4  ;;  %v1581_v4 = vadd.f32 -1.0, %v110_v3  ;;  %v1589_v61 = vadd.f32 -1.0, %v114_v9  ;;  %v130_v2 = vld [vmem:[#allocation3 + $0x2b8] sm:$0xff]  ;;  %v133_v9 = vld [vmem:[#allocation3 + $0x2d0] sm:$0xff] }
  0x26   :  { %2700 = vst [vmem:[#allocation33_spill] sm:$0xff] %v1551_v14  ;;  %v117_v14 = vld [vmem:[#allocation3 + $0x250] sm:$0xff]  ;;  %v1621_v45 = vadd.f32 -1.0, %v130_v2  ;;  %v1627_v41 = vadd.f32 -1.0, %v133_v9 }
  0x27   :  { %2701 = vst [vmem:[#allocation34_spill] sm:$0xff] %v1553_v18  ;;  %v116_v18 = vld [vmem:[#allocation3 + $0x248] sm:$0xff]  ;;  %v1595_v3 = vadd.f32 -1.0, %v117_v14 }
  0x28   :  { %2702 = vst [vmem:[#allocation35_spill] sm:$0xff] %v1555_v32  ;;  %v120_v32 = vld [vmem:[#allocation3 + $0x268] sm:$0xff]  ;;  %v1593_v19 = vadd.f32 -1.0, %v116_v18 }
  0x29   :  { %2703 = vst [vmem:[#allocation36_spill] sm:$0xff] %v1557_v26  ;;  %v119_v26 = vld [vmem:[#allocation3 + $0x260] sm:$0xff]  ;;  %v1601_v7 = vadd.f32 -1.0, %v120_v32  ;;  %v136_v14 = vld [vmem:[#allocation3 + $0x2e8] sm:$0xff] }
  0x2a   :  { %2704 = vst [vmem:[#allocation37_spill] sm:$0xff] %v1563_v38  ;;  %v123_v38 = vld [vmem:[#allocation3 + $0x280] sm:$0xff] }
  0x2b   :  { %2705 = vst [vmem:[#allocation38_spill] sm:$0xff] %v1565_v42  ;;  %v122_v42 = vld [vmem:[#allocation3 + $0x278] sm:$0xff]  ;;  %v1607_v18 = vadd.f32 -1.0, %v123_v38  ;;  %v139_v32 = vld [vmem:[#allocation3 + $0x300] sm:$0xff] }
  0x2c   :  { %2706 = vst [vmem:[#allocation39_spill] sm:$0xff] %v1567_v11  ;;  %v1585_v11 = vadd.f32 -1.0, %v112_v31  ;;  %v1599_v31 = vadd.f32 -1.0, %v119_v26  ;;  %v1605_v43 = vadd.f32 -1.0, %v122_v42  ;;  %v1619_v42 = vadd.f32 -1.0, %v129_v58  ;;  %v142_v38 = vld [vmem:[#allocation3 + $0x318] sm:$0xff] }
  0x2d   :  { %2707 = vst [vmem:[#allocation40_spill] sm:$0xff] %v1569_v50  ;;  %v126_v50 = vld [vmem:[#allocation3 + $0x298] sm:$0xff]  ;;  %v148_v58 = vld [vmem:[#allocation3 + $0x348] sm:$0xff] }
  0x2e   :  { %2708 = vst [vmem:[#allocation41_spill] sm:$0xff] %v1571_v54  ;;  %v125_v54 = vld [vmem:[#allocation3 + $0x290] sm:$0xff]  ;;  %v1613_v26 = vadd.f32 -1.0, %v126_v50 }
  0x2f   :  { %2709 = vst [vmem:[#allocation42_spill] sm:$0xff] %v1573_v5  ;;  %v128_v5 = vld [vmem:[#allocation3 + $0x2a8] sm:$0xff]  ;;  %v145_v50 = vld [vmem:[#allocation3 + $0x330] sm:$0xff] }
  0x30   :  { %2710 = vst [vmem:[#allocation43_spill] sm:$0xff] %v1579_v59  ;;  %v1597_v59 = vadd.f32 -1.0, %v118_v55  ;;  %v1611_v55 = vadd.f32 -1.0, %v125_v54 }
  0x31   :  { %2711 = vst [vmem:[#allocation44_spill] sm:$0xff] %v1581_v4  ;;  %v132_v4 = vld [vmem:[#allocation3 + $0x2c8] sm:$0xff] }
  0x32   :  { %2712 = vst [vmem:[#allocation45_spill] sm:$0xff] %v1583_v44  ;;  %v131_v44 = vld [vmem:[#allocation3 + $0x2c0] sm:$0xff]  ;;  %v1625_v54 = vadd.f32 -1.0, %v132_v4 }
  0x33   :  { %2713 = vst [vmem:[#allocation46_spill] sm:$0xff] %v1585_v11  ;;  %v1603_v11 = vadd.f32 -1.0, %v121_v36  ;;  %v1617_v36 = vadd.f32 -1.0, %v128_v5  ;;  %v1623_v25 = vadd.f32 -1.0, %v131_v44  ;;  %v1637_v44 = vadd.f32 -1.0, %v138_v53  ;;  %v151_v4 = vld [vmem:[#allocation3 + $0x360] sm:$0xff] }
  0x34   :  { %2714 = vst [vmem:[#allocation47_spill] sm:$0xff] %v1587_v10  ;;  %v135_v10 = vld [vmem:[#allocation3 + $0x2e0] sm:$0xff]  ;;  %v157_v53 = vld [vmem:[#allocation3 + $0x390] sm:$0xff] }
  0x35   :  { %2715 = vst [vmem:[#allocation48_spill] sm:$0xff] %v1589_v61  ;;  %v134_v61 = vld [vmem:[#allocation3 + $0x2d8] sm:$0xff]  ;;  %v1631_v5 = vadd.f32 -1.0, %v135_v10 }
  0x36   :  { %2716 = vst [vmem:[#allocation49_spill] sm:$0xff] %v1595_v3  ;;  %v137_v3 = vld [vmem:[#allocation3 + $0x2f0] sm:$0xff]  ;;  %v154_v10 = vld [vmem:[#allocation3 + $0x378] sm:$0xff] }
  0x37   :  { %2717 = vst [vmem:[#allocation50_spill] sm:$0xff] %v1597_v59  ;;  %v1615_v59 = vadd.f32 -1.0, %v127_v60  ;;  %v1629_v60 = vadd.f32 -1.0, %v134_v61  ;;  %v1635_v2 = vadd.f32 -1.0, %v137_v3 }
  0x38   :  { %2718 = vst [vmem:[#allocation51_spill] sm:$0xff] %v1599_v31  ;;  %v141_v31 = vld [vmem:[#allocation3 + $0x310] sm:$0xff] }
  0x39   :  { %2719 = vst [vmem:[#allocation52_spill] sm:$0xff] %v1601_v7  ;;  %v140_v7 = vld [vmem:[#allocation3 + $0x308] sm:$0xff]  ;;  %v1643_v61 = vadd.f32 -1.0, %v141_v31 }
  0x3a   :  { %2720 = vst [vmem:[#allocation53_spill] sm:$0xff] %v1603_v11  ;;  %v144_v11 = vld [vmem:[#allocation3 + $0x328] sm:$0xff]  ;;  %v1641_v9 = vadd.f32 -1.0, %v140_v7 }
  0x3b   :  { %2721 = vst [vmem:[#allocation54_spill] sm:$0xff] %v1605_v43  ;;  %v143_v43 = vld [vmem:[#allocation3 + $0x320] sm:$0xff]  ;;  %v1649_v3 = vadd.f32 -1.0, %v144_v11  ;;  %v160_v31 = vld [vmem:[#allocation3 + $0x3a8] sm:$0xff] }
  0x3c   :  { %2722 = vst [vmem:[#allocation55_spill] sm:$0xff] %v1611_v55  ;;  %v147_v55 = vld [vmem:[#allocation3 + $0x340] sm:$0xff] }
  0x3d   :  { %2723 = vst [vmem:[#allocation56_spill] sm:$0xff] %v1613_v26  ;;  %v146_v26 = vld [vmem:[#allocation3 + $0x338] sm:$0xff]  ;;  %v1655_v7 = vadd.f32 -1.0, %v147_v55  ;;  %v163_v11 = vld [vmem:[#allocation3 + $0x3c0] sm:$0xff] }
  0x3e   :  { %2724 = vst [vmem:[#allocation57_spill] sm:$0xff] %v1615_v59  ;;  %v1633_v59 = vadd.f32 -1.0, %v136_v14  ;;  %v1647_v14 = vadd.f32 -1.0, %v143_v43  ;;  %v166_v55 = vld [vmem:[#allocation3 + $0x3d8] sm:$0xff] }
  0x3f   :  { %2725 = vst [vmem:[#allocation58_spill] sm:$0xff] %v1617_v36  ;;  %v150_v36 = vld [vmem:[#allocation3 + $0x358] sm:$0xff] }
  0x40   :  { %2726 = vst [vmem:[#allocation59_spill] sm:$0xff] %v1619_v42  ;;  %v149_v42 = vld [vmem:[#allocation3 + $0x350] sm:$0xff]  ;;  %v1661_v43 = vadd.f32 -1.0, %v150_v36 }
  0x41   :  { %2727 = vst [vmem:[#allocation60_spill] sm:$0xff] %v1621_v45  ;;  %v152_v45 = vld [vmem:[#allocation3 + $0x368] sm:$0xff]  ;;  %v169_v36 = vld [vmem:[#allocation3 + $0x3f0] sm:$0xff] }
  0x42   :  { %2728 = vst [vmem:[#allocation61_spill] sm:$0xff] %v1623_v25  ;;  %v1639_v25 = vadd.f32 -1.0, %v139_v32  ;;  %v1653_v32 = vadd.f32 -1.0, %v146_v26 }
  0x43   :  { %2729 = vst [vmem:[#allocation62_spill] sm:$0xff] %v1625_v54  ;;  %v153_v54 = vld [vmem:[#allocation3 + $0x370] sm:$0xff] }
  0x44   :  { %2730 = vst [vmem:[#allocation63_spill] sm:$0xff] %v1627_v41  ;;  %v1645_v41 = vadd.f32 -1.0, %v142_v38  ;;  %v1659_v38 = vadd.f32 -1.0, %v149_v42  ;;  %v1667_v26 = vadd.f32 -1.0, %v153_v54  ;;  %v172_v54 = vld [vmem:[#allocation3 + $0x408] sm:$0xff] }
  0x45   :  { %2731 = vst [vmem:[#allocation64_spill] sm:$0xff] %v1629_v60  ;;  %v156_v60 = vld [vmem:[#allocation3 + $0x388] sm:$0xff] }
  0x46   :  { %2732 = vst [vmem:[#allocation65_spill] sm:$0xff] %v1631_v5  ;;  %v155_v5 = vld [vmem:[#allocation3 + $0x380] sm:$0xff]  ;;  %v1673_v42 = vadd.f32 -1.0, %v156_v60 }
  0x47   :  { %2733 = vst [vmem:[#allocation66_spill] sm:$0xff] %v1633_v59  ;;  %v1651_v59 = vadd.f32 -1.0, %v145_v50  ;;  %v1665_v50 = vadd.f32 -1.0, %v152_v45  ;;  %v175_v60 = vld [vmem:[#allocation3 + $0x420] sm:$0xff] }
  0x48   :  { %2734 = vst [vmem:[#allocation67_spill] sm:$0xff] %v1635_v2  ;;  %v159_v2 = vld [vmem:[#allocation3 + $0x3a0] sm:$0xff] }
  0x49   :  { %2735 = vst [vmem:[#allocation68_spill] sm:$0xff] %v1637_v44  ;;  %v158_v44 = vld [vmem:[#allocation3 + $0x398] sm:$0xff]  ;;  %v1679_v45 = vadd.f32 -1.0, %v159_v2 }
  0x4a   :  { %2736 = vst [vmem:[#allocation69_spill] sm:$0xff] %v1639_v25  ;;  %v1657_v25 = vadd.f32 -1.0, %v148_v58  ;;  %v1671_v58 = vadd.f32 -1.0, %v155_v5  ;;  %v178_v2 = vld [vmem:[#allocation3 + $0x438] sm:$0xff] }
  0x4b   :  { %2737 = vst [vmem:[#allocation70_spill] sm:$0xff] %v1641_v9  ;;  %v162_v9 = vld [vmem:[#allocation3 + $0x3b8] sm:$0xff] }
  0x4c   :  { %2738 = vst [vmem:[#allocation71_spill] sm:$0xff] %v1643_v61  ;;  %v161_v61 = vld [vmem:[#allocation3 + $0x3b0] sm:$0xff]  ;;  %v1685_v5 = vadd.f32 -1.0, %v162_v9 }
  0x4d   :  { %2739 = vst [vmem:[#allocation72_spill] sm:$0xff] %v1645_v41  ;;  %v1663_v41 = vadd.f32 -1.0, %v151_v4  ;;  %v1677_v4 = vadd.f32 -1.0, %v158_v44  ;;  %v181_v9 = vld [vmem:[#allocation3 + $0x450] sm:$0xff] }
  0x4e   :  { %2740 = vst [vmem:[#allocation73_spill] sm:$0xff] %v1647_v14  ;;  %v165_v14 = vld [vmem:[#allocation3 + $0x3d0] sm:$0xff] }
  0x4f   :  { %2741 = vst [vmem:[#allocation74_spill] sm:$0xff] %v1649_v3  ;;  %v164_v3 = vld [vmem:[#allocation3 + $0x3c8] sm:$0xff]  ;;  %v1691_v44 = vadd.f32 -1.0, %v165_v14 }
  0x50   :  { %2742 = vst [vmem:[#allocation75_spill] sm:$0xff] %v1651_v59  ;;  %v168_v59 = vld [vmem:[#allocation3 + $0x3e8] sm:$0xff] }
  0x51   :  { %2743 = vst [vmem:[#allocation76_spill] sm:$0xff] %v1653_v32  ;;  %v167_v32 = vld [vmem:[#allocation3 + $0x3e0] sm:$0xff]  ;;  %v184_v14 = vld [vmem:[#allocation3 + $0x468] sm:$0xff] }
  0x52   :  { %2744 = vst [vmem:[#allocation77_spill] sm:$0xff] %v1655_v7  ;;  %v1669_v7 = vadd.f32 -1.0, %v154_v10  ;;  %v1683_v10 = vadd.f32 -1.0, %v161_v61  ;;  %v1697_v61 = vadd.f32 -1.0, %v168_v59  ;;  %v187_v59 = vld [vmem:[#allocation3 + $0x480] sm:$0xff] }
  0x53   :  { %2745 = vst [vmem:[#allocation78_spill] sm:$0xff] %v1657_v25  ;;  %v1675_v25 = vadd.f32 -1.0, %v157_v53  ;;  %v1689_v53 = vadd.f32 -1.0, %v164_v3 }
  0x54   :  { %2746 = vst [vmem:[#allocation79_spill] sm:$0xff] %v1659_v38  ;;  %v171_v38 = vld [vmem:[#allocation3 + $0x400] sm:$0xff] }
  0x55   :  { %2747 = vst [vmem:[#allocation80_spill] sm:$0xff] %v1661_v43  ;;  %v170_v43 = vld [vmem:[#allocation3 + $0x3f8] sm:$0xff]  ;;  %v1703_v3 = vadd.f32 -1.0, %v171_v38 }
  0x56   :  { %2748 = vst [vmem:[#allocation81_spill] sm:$0xff] %v1663_v41  ;;  %v1681_v41 = vadd.f32 -1.0, %v160_v31  ;;  %v1695_v31 = vadd.f32 -1.0, %v167_v32  ;;  %v190_v38 = vld [vmem:[#allocation3 + $0x498] sm:$0xff] }
  0x57   :  { %2749 = vst [vmem:[#allocation82_spill] sm:$0xff] %v1665_v50  ;;  %v174_v50 = vld [vmem:[#allocation3 + $0x418] sm:$0xff] }
  0x58   :  { %2750 = vst [vmem:[#allocation83_spill] sm:$0xff] %v1667_v26  ;;  %v173_v26 = vld [vmem:[#allocation3 + $0x410] sm:$0xff]  ;;  %v1709_v32 = vadd.f32 -1.0, %v174_v50 }
  0x59   :  { %2751 = vst [vmem:[#allocation84_spill] sm:$0xff] %v1669_v7  ;;  %v176_v7 = vld [vmem:[#allocation3 + $0x428] sm:$0xff]  ;;  %v193_v50 = vld [vmem:[#allocation3 + $0x4b0] sm:$0xff] }
  0x5a   :  { %2752 = vst [vmem:[#allocation85_spill] sm:$0xff] %v1671_v58  ;;  %v1687_v58 = vadd.f32 -1.0, %v163_v11  ;;  %v1701_v11 = vadd.f32 -1.0, %v170_v43 }
  0x5b   :  { %2753 = vst [vmem:[#allocation86_spill] sm:$0xff] %v1673_v42  ;;  %v177_v42 = vld [vmem:[#allocation3 + $0x430] sm:$0xff] }
  0x5c   :  { %2754 = vst [vmem:[#allocation87_spill] sm:$0xff] %v1675_v25  ;;  %v1693_v25 = vadd.f32 -1.0, %v166_v55  ;;  %v1707_v55 = vadd.f32 -1.0, %v173_v26  ;;  %v1715_v43 = vadd.f32 -1.0, %v177_v42  ;;  %v196_v42 = vld [vmem:[#allocation3 + $0x4c8] sm:$0xff] }
  0x5d   :  { %2755 = vst [vmem:[#allocation88_spill] sm:$0xff] %v1677_v4  ;;  %v180_v4 = vld [vmem:[#allocation3 + $0x448] sm:$0xff] }
  0x5e   :  { %2756 = vst [vmem:[#allocation89_spill] sm:$0xff] %v1679_v45  ;;  %v179_v45 = vld [vmem:[#allocation3 + $0x440] sm:$0xff]  ;;  %v1721_v26 = vadd.f32 -1.0, %v180_v4 }
  0x5f   :  { %2757 = vst [vmem:[#allocation90_spill] sm:$0xff] %v1681_v41  ;;  %v1699_v41 = vadd.f32 -1.0, %v169_v36  ;;  %v1713_v36 = vadd.f32 -1.0, %v176_v7  ;;  %v199_v4 = vld [vmem:[#allocation3 + $0x4e0] sm:$0xff] }
  0x60   :  { %2758 = vst [vmem:[#allocation91_spill] sm:$0xff] %v1683_v10  ;;  %v183_v10 = vld [vmem:[#allocation3 + $0x460] sm:$0xff] }
  0x61   :  { %2759 = vst [vmem:[#allocation92_spill] sm:$0xff] %v1685_v5  ;;  %v182_v5 = vld [vmem:[#allocation3 + $0x458] sm:$0xff]  ;;  %v1727_v7 = vadd.f32 -1.0, %v183_v10 }
  0x62   :  { %2760 = vst [vmem:[#allocation93_spill] sm:$0xff] %v1687_v58  ;;  %v1705_v58 = vadd.f32 -1.0, %v172_v54  ;;  %v1719_v54 = vadd.f32 -1.0, %v179_v45  ;;  %v202_v10 = vld [vmem:[#allocation3 + $0x4f8] sm:$0xff] }
  0x63   :  { %2761 = vst [vmem:[#allocation94_spill] sm:$0xff] %v1689_v53  ;;  %v186_v53 = vld [vmem:[#allocation3 + $0x478] sm:$0xff] }
  0x64   :  { %2762 = vst [vmem:[#allocation95_spill] sm:$0xff] %v1691_v44  ;;  %v185_v44 = vld [vmem:[#allocation3 + $0x470] sm:$0xff]  ;;  %v1733_v45 = vadd.f32 -1.0, %v186_v53 }
  0x65   :  { %2763 = vst [vmem:[#allocation96_spill] sm:$0xff] %v1693_v25  ;;  %v1711_v25 = vadd.f32 -1.0, %v175_v60  ;;  %v1725_v60 = vadd.f32 -1.0, %v182_v5  ;;  %v205_v53 = vld [vmem:[#allocation3 + $0x510] sm:$0xff] }
  0x66   :  { %2764 = vst [vmem:[#allocation97_spill] sm:$0xff] %v1695_v31  ;;  %v189_v31 = vld [vmem:[#allocation3 + $0x490] sm:$0xff] }
  0x67   :  { %2765 = vst [vmem:[#allocation98_spill] sm:$0xff] %v1697_v61  ;;  %v188_v61 = vld [vmem:[#allocation3 + $0x488] sm:$0xff]  ;;  %v1739_v5 = vadd.f32 -1.0, %v189_v31 }
  0x68   :  { %2766 = vst [vmem:[#allocation99_spill] sm:$0xff] %v1699_v41  ;;  %v192_v41 = vld [vmem:[#allocation3 + $0x4a8] sm:$0xff] }
  0x69   :  { %2767 = vst [vmem:[#allocation100_spill] sm:$0xff] %v1701_v11  ;;  %v191_v11 = vld [vmem:[#allocation3 + $0x4a0] sm:$0xff]  ;;  %v208_v31 = vld [vmem:[#allocation3 + $0x528] sm:$0xff] }
  0x6a   :  { %2768 = vst [vmem:[#allocation101_spill] sm:$0xff] %v1703_v3  ;;  %v1717_v3 = vadd.f32 -1.0, %v178_v2  ;;  %v1731_v2 = vadd.f32 -1.0, %v185_v44  ;;  %v1745_v44 = vadd.f32 -1.0, %v192_v41  ;;  %v211_v41 = vld [vmem:[#allocation3 + $0x540] sm:$0xff] }
  0x6b   :  { %2769 = vst [vmem:[#allocation102_spill] sm:$0xff] %v1705_v58  ;;  %v1723_v58 = vadd.f32 -1.0, %v181_v9  ;;  %v1737_v9 = vadd.f32 -1.0, %v188_v61 }
  0x6c   :  { %2770 = vst [vmem:[#allocation103_spill] sm:$0xff] %v1707_v55  ;;  %v195_v55 = vld [vmem:[#allocation3 + $0x4c0] sm:$0xff] }
  0x6d   :  { %2771 = vst [vmem:[#allocation104_spill] sm:$0xff] %v1709_v32  ;;  %v194_v32 = vld [vmem:[#allocation3 + $0x4b8] sm:$0xff]  ;;  %v1751_v61 = vadd.f32 -1.0, %v195_v55 }
  0x6e   :  { %2772 = vst [vmem:[#allocation105_spill] sm:$0xff] %v1711_v25  ;;  %v1729_v25 = vadd.f32 -1.0, %v184_v14  ;;  %v1743_v14 = vadd.f32 -1.0, %v191_v11  ;;  %v214_v55 = vld [vmem:[#allocation3 + $0x558] sm:$0xff] }
  0x6f   :  { %2773 = vst [vmem:[#allocation106_spill] sm:$0xff] %v1713_v36  ;;  %v198_v36 = vld [vmem:[#allocation3 + $0x4d8] sm:$0xff] }
  0x70   :  { %2774 = vst [vmem:[#allocation107_spill] sm:$0xff] %v1715_v43  ;;  %v197_v43 = vld [vmem:[#allocation3 + $0x4d0] sm:$0xff]  ;;  %v1757_v11 = vadd.f32 -1.0, %v198_v36 }
  0x71   :  { %2775 = vst [vmem:[#allocation108_spill] sm:$0xff] %v1717_v3  ;;  %v200_v3 = vld [vmem:[#allocation3 + $0x4e8] sm:$0xff]  ;;  %v217_v36 = vld [vmem:[#allocation3 + $0x570] sm:$0xff] }
  0x72   :  { %2776 = vst [vmem:[#allocation109_spill] sm:$0xff] %v1719_v54  ;;  %v1735_v54 = vadd.f32 -1.0, %v187_v59  ;;  %v1749_v59 = vadd.f32 -1.0, %v194_v32 }
  0x73   :  { %2777 = vst [vmem:[#allocation110_spill] sm:$0xff] %v1721_v26  ;;  %v201_v26 = vld [vmem:[#allocation3 + $0x4f0] sm:$0xff] }
  0x74   :  { %2778 = vst [vmem:[#allocation111_spill] sm:$0xff] %v1723_v58  ;;  %v1741_v58 = vadd.f32 -1.0, %v190_v38  ;;  %v1755_v38 = vadd.f32 -1.0, %v197_v43  ;;  %v1763_v32 = vadd.f32 -1.0, %v201_v26  ;;  %v220_v26 = vld [vmem:[#allocation3 + $0x588] sm:$0xff] }
  0x75   :  { %2779 = vst [vmem:[#allocation112_spill] sm:$0xff] %v1725_v60  ;;  %v204_v60 = vld [vmem:[#allocation3 + $0x508] sm:$0xff] }
  0x76   :  { %2780 = vst [vmem:[#allocation113_spill] sm:$0xff] %v1727_v7  ;;  %v203_v7 = vld [vmem:[#allocation3 + $0x500] sm:$0xff]  ;;  %v1769_v43 = vadd.f32 -1.0, %v204_v60 }
  0x77   :  { %2781 = vst [vmem:[#allocation114_spill] sm:$0xff] %v1729_v25  ;;  %v1747_v25 = vadd.f32 -1.0, %v193_v50  ;;  %v1761_v50 = vadd.f32 -1.0, %v200_v3  ;;  %v223_v60 = vld [vmem:[#allocation3 + $0x5a0] sm:$0xff] }
  0x78   :  { %2782 = vst [vmem:[#allocation115_spill] sm:$0xff] %v1731_v2  ;;  %v207_v2 = vld [vmem:[#allocation3 + $0x520] sm:$0xff] }
  0x79   :  { %2783 = vst [vmem:[#allocation116_spill] sm:$0xff] %v1733_v45  ;;  %v206_v45 = vld [vmem:[#allocation3 + $0x518] sm:$0xff]  ;;  %v1775_v3 = vadd.f32 -1.0, %v207_v2 }
  0x7a   :  { %2784 = vst [vmem:[#allocation117_spill] sm:$0xff] %v1735_v54  ;;  %v1753_v54 = vadd.f32 -1.0, %v196_v42  ;;  %v1767_v42 = vadd.f32 -1.0, %v203_v7  ;;  %v226_v2 = vld [vmem:[#allocation3 + $0x5b8] sm:$0xff] }
  0x7b   :  { %2785 = vst [vmem:[#allocation118_spill] sm:$0xff] %v1737_v9  ;;  %v210_v9 = vld [vmem:[#allocation3 + $0x538] sm:$0xff] }
  0x7c   :  { %2786 = vst [vmem:[#allocation119_spill] sm:$0xff] %v1739_v5  ;;  %v209_v5 = vld [vmem:[#allocation3 + $0x530] sm:$0xff]  ;;  %v1781_v7 = vadd.f32 -1.0, %v210_v9 }
  0x7d   :  { %2787 = vst [vmem:[#allocation120_spill] sm:$0xff] %v1741_v58  ;;  %v1759_v58 = vadd.f32 -1.0, %v199_v4  ;;  %v1773_v4 = vadd.f32 -1.0, %v206_v45  ;;  %v229_v9 = vld [vmem:[#allocation3 + $0x5d0] sm:$0xff] }
  0x7e   :  { %2788 = vst [vmem:[#allocation121_spill] sm:$0xff] %v1743_v14  ;;  %v213_v14 = vld [vmem:[#allocation3 + $0x550] sm:$0xff] }
  0x7f   :  { %2789 = vst [vmem:[#allocation122_spill] sm:$0xff] %v1745_v44  ;;  %v212_v44 = vld [vmem:[#allocation3 + $0x548] sm:$0xff]  ;;  %v1787_v45 = vadd.f32 -1.0, %v213_v14 }
  0x80   :  { %2790 = vst [vmem:[#allocation123_spill] sm:$0xff] %v1747_v25  ;;  %v216_v25 = vld [vmem:[#allocation3 + $0x568] sm:$0xff] }
  0x81   :  { %2791 = vst [vmem:[#allocation124_spill] sm:$0xff] %v1749_v59  ;;  %v215_v59 = vld [vmem:[#allocation3 + $0x560] sm:$0xff]  ;;  %v232_v14 = vld [vmem:[#allocation3 + $0x5e8] sm:$0xff] }
  0x82   :  { %2792 = vst [vmem:[#allocation125_spill] sm:$0xff] %v1751_v61  ;;  %v1765_v61 = vadd.f32 -1.0, %v202_v10  ;;  %v1779_v10 = vadd.f32 -1.0, %v209_v5  ;;  %v1793_v5 = vadd.f32 -1.0, %v216_v25  ;;  %v235_v25 = vld [vmem:[#allocation3 + $0x600] sm:$0xff] }
  0x83   :  { %2793 = vst [vmem:[#allocation126_spill] sm:$0xff] %v1753_v54  ;;  %v1771_v54 = vadd.f32 -1.0, %v205_v53  ;;  %v1785_v53 = vadd.f32 -1.0, %v212_v44 }
  0x84   :  { %2794 = vst [vmem:[#allocation127_spill] sm:$0xff] %v1755_v38  ;;  %v219_v38 = vld [vmem:[#allocation3 + $0x580] sm:$0xff] }
  0x85   :  { %2795 = vst [vmem:[#allocation128_spill] sm:$0xff] %v1757_v11  ;;  %v218_v11 = vld [vmem:[#allocation3 + $0x578] sm:$0xff]  ;;  %v1799_v44 = vadd.f32 -1.0, %v219_v38 }
  0x86   :  { %2796 = vst [vmem:[#allocation129_spill] sm:$0xff] %v1759_v58  ;;  %v1777_v58 = vadd.f32 -1.0, %v208_v31  ;;  %v1791_v31 = vadd.f32 -1.0, %v215_v59  ;;  %v238_v38 = vld [vmem:[#allocation3 + $0x618] sm:$0xff] }
  0x87   :  { %2797 = vst [vmem:[#allocation130_spill] sm:$0xff] %v1761_v50  ;;  %v222_v50 = vld [vmem:[#allocation3 + $0x598] sm:$0xff] }
  0x88   :  { %2798 = vst [vmem:[#allocation131_spill] sm:$0xff] %v1763_v32  ;;  %v221_v32 = vld [vmem:[#allocation3 + $0x590] sm:$0xff]  ;;  %v1805_v59 = vadd.f32 -1.0, %v222_v50 }
  0x89   :  { %2799 = vst [vmem:[#allocation132_spill] sm:$0xff] %v1765_v61  ;;  %v224_v61 = vld [vmem:[#allocation3 + $0x5a8] sm:$0xff]  ;;  %v241_v50 = vld [vmem:[#allocation3 + $0x630] sm:$0xff] }
  0x8a   :  { %2800 = vst [vmem:[#allocation133_spill] sm:$0xff] %v1767_v42  ;;  %v1783_v42 = vadd.f32 -1.0, %v211_v41  ;;  %v1797_v41 = vadd.f32 -1.0, %v218_v11 }
  0x8b   :  { %2801 = vst [vmem:[#allocation134_spill] sm:$0xff] %v1769_v43  ;;  %v225_v43 = vld [vmem:[#allocation3 + $0x5b0] sm:$0xff] }
  0x8c   :  { %2802 = vst [vmem:[#allocation135_spill] sm:$0xff] %v1771_v54  ;;  %v1789_v54 = vadd.f32 -1.0, %v214_v55  ;;  %v1803_v55 = vadd.f32 -1.0, %v221_v32  ;;  %v1811_v11 = vadd.f32 -1.0, %v225_v43  ;;  %v244_v43 = vld [vmem:[#allocation3 + $0x648] sm:$0xff] }
  0x8d   :  { %2803 = vst [vmem:[#allocation136_spill] sm:$0xff] %v1773_v4  ;;  %v228_v4 = vld [vmem:[#allocation3 + $0x5c8] sm:$0xff] }
  0x8e   :  { %2804 = vst [vmem:[#allocation137_spill] sm:$0xff] %v1775_v3  ;;  %v227_v3 = vld [vmem:[#allocation3 + $0x5c0] sm:$0xff]  ;;  %v1817_v32 = vadd.f32 -1.0, %v228_v4  ;;  %v246_v4 = vld [vmem:[#allocation3 + $0x658] sm:$0xff] }
  0x8f   :  { %2805 = vst [vmem:[#allocation138_spill] sm:$0xff] %v1777_v58  ;;  %v1795_v58 = vadd.f32 -1.0, %v217_v36  ;;  %v1809_v36 = vadd.f32 -1.0, %v224_v61 }
  0x90   :  { %2806 = vst [vmem:[#allocation139_spill] sm:$0xff] %v1779_v10  ;;  %v231_v10 = vld [vmem:[#allocation3 + $0x5e0] sm:$0xff] }
  0x91   :  { %2807 = vst [vmem:[#allocation140_spill] sm:$0xff] %v1781_v7  ;;  %v230_v7 = vld [vmem:[#allocation3 + $0x5d8] sm:$0xff]  ;;  %v1823_v61 = vadd.f32 -1.0, %v231_v10 }
  0x92   :  { %2808 = vst [vmem:[#allocation141_spill] sm:$0xff] %v1783_v42  ;;  %v1801_v42 = vadd.f32 -1.0, %v220_v26  ;;  %v1815_v26 = vadd.f32 -1.0, %v227_v3  ;;  %v1831_v3 = vadd.f32 -1.0, %v235_v25 }
  0x93   :  { %2809 = vst [vmem:[#allocation142_spill] sm:$0xff] %v1785_v53  ;;  %v234_v53 = vld [vmem:[#allocation3 + $0x5f8] sm:$0xff] }
  0x94   :  { %2810 = vst [vmem:[#allocation143_spill] sm:$0xff] %v1787_v45  ;;  %v233_v45 = vld [vmem:[#allocation3 + $0x5f0] sm:$0xff] }
  0x95   :  { %2811 = vst [vmem:[#allocation144_spill] sm:$0xff] %v1789_v54  ;;  %v1807_v54 = vadd.f32 -1.0, %v223_v60  ;;  %v1821_v60 = vadd.f32 -1.0, %v230_v7  ;;  %v1837_v7 = vadd.f32 -1.0, %v238_v38  ;;  %v555_v38 = vand.u32 2147483647, %v1447_v15 }
  0x96   :  { %2812 = vst [vmem:[#allocation145_spill] sm:$0xff] %v1791_v31  ;;  %v237_v31 = vld [vmem:[#allocation3 + $0x610] sm:$0xff] }
  0x97   :  { %2813 = vst [vmem:[#allocation146_spill] sm:$0xff] %v1793_v5  ;;  %v236_v5 = vld [vmem:[#allocation3 + $0x608] sm:$0xff] }
  0x98   :  { %2814 = vst [vmem:[#allocation147_spill] sm:$0xff] %v1795_v58  ;;  %v240_v58 = vld [vmem:[#allocation3 + $0x628] sm:$0xff] }
  0x99   :  { %2815 = vst [vmem:[#allocation148_spill] sm:$0xff] %v1797_v41  ;;  %v239_v41 = vld [vmem:[#allocation3 + $0x620] sm:$0xff] }
  0x9a   :  { %2816 = vst [vmem:[#allocation149_spill] sm:$0xff] %v1799_v44  ;;  %v1813_v44 = vadd.f32 -1.0, %v226_v2  ;;  %v1829_v2 = vadd.f32 -1.0, %v234_v53  ;;  %v1839_v10 = vadd.f32 -1.0, %v239_v41  ;;  %v252_v41 = vld [vmem:[#allocation3 + $0x688] sm:$0xff] }
  0x9b   :  { %2817 = vst [vmem:[#allocation150_spill] sm:$0xff] %v1801_v42  ;;  %v1819_v42 = vadd.f32 -1.0, %v229_v9  ;;  %v1835_v9 = vadd.f32 -1.0, %v237_v31 }
  0x9c   :  { %2818 = vst [vmem:[#allocation151_spill] sm:$0xff] %v1803_v55  ;;  %v243_v55 = vld [vmem:[#allocation3 + $0x640] sm:$0xff] }
  0x9d   :  { %2819 = vst [vmem:[#allocation152_spill] sm:$0xff] %v1805_v59  ;;  %v242_v59 = vld [vmem:[#allocation3 + $0x638] sm:$0xff]  ;;  %v1847_v25 = vadd.f32 -1.0, %v243_v55  ;;  %v563_v55 = vand.u32 2147483647, %v1463_v29  ;;  %v259_v29 = vld [vmem:[#allocation3 + $0x6c0] sm:$0xff] }
  0x9e   :  { %2820 = vst [vmem:[#allocation153_spill] sm:$0xff] %v1807_v54  ;;  %v1827_v54 = vadd.f32 -1.0, %v233_v45  ;;  %v1843_v45 = vadd.f32 -1.0, %v241_v50  ;;  %v1845_v53 = vadd.f32 -1.0, %v242_v59  ;;  %v556_v50 = vand.u32 2147483647, %v1449_v16 }
  0x9f   :  { %2821 = vst [vmem:[#allocation154_spill] sm:$0xff] %v1809_v36  ;;  %v1825_v36 = vadd.f32 -1.0, %v232_v14  ;;  %v1841_v14 = vadd.f32 -1.0, %v240_v58  ;;  %v254_v59 = vld [vmem:[#allocation3 + $0x698] sm:$0xff] }
  0xa0   :  { %2822 = vst [vmem:[#allocation155_spill] sm:$0xff] %v1811_v11  ;;  %v245_v11 = vld [vmem:[#allocation3 + $0x650] sm:$0xff] }
  0xa1   :  { %2823 = vst [vmem:[#allocation156_spill] sm:$0xff] %v1813_v44  ;;  %v1833_v44 = vadd.f32 -1.0, %v236_v5  ;;  %v1849_v5 = vadd.f32 -1.0, %v244_v43  ;;  %v1851_v31 = vadd.f32 -1.0, %v245_v11  ;;  %v564_v43 = vand.u32 2147483647, %v1465_v33 }
  0xa2   :  { %2824 = vst [vmem:[#allocation157_spill] sm:$0xff] %v1817_v32  ;;  %v247_v32 = vld [vmem:[#allocation3 + $0x660] sm:$0xff]  ;;  %v256_v11 = vld [vmem:[#allocation3 + $0x6a8] sm:$0xff]  ;;  %v261_v33 = vld [vmem:[#allocation3 + $0x6d0] sm:$0xff] }
  0xa3   :  { %2825 = vst [vmem:[#allocation158_spill] sm:$0xff] %v1821_v60  ;;  %v249_v60 = vld [vmem:[#allocation3 + $0x670] sm:$0xff]  ;;  %v1856_v58 = vadd.f32 -1.0, %v247_v32  ;;  %v258_v32 = vld [vmem:[#allocation3 + $0x6b8] sm:$0xff] }
  0xa4   :  { %2826 = vst [vmem:[#allocation159_spill] sm:$0xff] %v1823_v61  ;;  %v248_v61 = vld [vmem:[#allocation3 + $0x668] sm:$0xff] }
  0xa5   :  { %2827 = vst [vmem:[#allocation160_spill] sm:$0xff] %v1825_v36 }
  0xa6   :  { %2828 = vst [vmem:[#allocation161_spill] sm:$0xff] %v1829_v2  ;;  %v251_v2 = vld [vmem:[#allocation3 + $0x680] sm:$0xff] }
  0xa7   :  { %2829 = vst [vmem:[#allocation162_spill] sm:$0xff] %v1831_v3  ;;  %v250_v3 = vld [vmem:[#allocation3 + $0x678] sm:$0xff] }
  0xa8   :  { %2830 = vst [vmem:[#allocation163_spill] sm:$0xff] %v1837_v7  ;;  %v1854_v7 = vadd.f32 -1.0, %v246_v4  ;;  %v1865_v15 = vadd.f32 -1.0, %v250_v3  ;;  %v1867_v4 = vadd.f32 -1.0, %v251_v2  ;;  %v262_v3 = vld [vmem:[#allocation3 + $0x6d8] sm:$0xff]  ;;  %v264_v2 = vld [vmem:[#allocation3 + $0x6e8] sm:$0xff] }
  0xa9   :  { %2831 = vst [vmem:[#allocation164_spill] sm:$0xff] %v1839_v10  ;;  %v253_v10 = vld [vmem:[#allocation3 + $0x690] sm:$0xff] }
  0xaa   :  { %2832 = vst [vmem:[#allocation165_spill] sm:$0xff] %v1843_v45  ;;  %v1871_v16 = vadd.f32 -1.0, %v253_v10  ;;  %v1874_v45 = vadd.f32 -1.0, %v254_v59  ;;  %v580_v59 = vand.u32 2147483647, %v1497_v0  ;;  %v271_v0 = vld [vmem:[#allocation3 + $0x720] sm:$0xff] }
  0xab   :  { %2833 = vst [vmem:[#allocation166_spill] sm:$0xff] %v1845_v53  ;;  %v1859_v53 = vadd.f32 -1.0, %v248_v61  ;;  %v571_v61 = vand.u32 2147483647, %v1479_v46  ;;  %v265_v46 = vld [vmem:[#allocation3 + $0x6f0] sm:$0xff] }
  0xac   :  { %2834 = vst [vmem:[#allocation167_spill] sm:$0xff] %v1847_v25  ;;  %v1863_v25 = vadd.f32 -1.0, %v249_v60  ;;  %v572_v60 = vand.u32 2147483647, %v1481_v47  ;;  %v266_v47 = vld [vmem:[#allocation3 + $0x6f8] sm:$0xff] }
  0xad   :  { %2835 = vst [vmem:[#allocation168_spill] sm:$0xff] %v1849_v5  ;;  %v255_v5 = vld [vmem:[#allocation3 + $0x6a0] sm:$0xff] }
  0xae   :  { %2836 = vst [vmem:[#allocation169_spill] sm:$0xff] %v1851_v31  ;;  %v257_v31 = vld [vmem:[#allocation3 + $0x6b0] sm:$0xff] }
  0xaf   :  { %2837 = vst [vmem:[#allocation170_spill] sm:$0xff] %v1854_v7  ;;  %v260_v7 = vld [vmem:[#allocation3 + $0x6c8] sm:$0xff]  ;;  %v1881_v10 = vadd.f32 -1.0, %v257_v31  ;;  %v269_v31 = vld [vmem:[#allocation3 + $0x710] sm:$0xff] }
  0xb0   :  { %2838 = vst [vmem:[#allocation171_spill] sm:$0xff] %v1856_v58  ;;  %v1869_v58 = vadd.f32 -1.0, %v252_v41  ;;  %v1879_v41 = vadd.f32 -1.0, %v256_v11  ;;  %v1891_v11 = vadd.f32 -1.0, %v261_v33  ;;  %v1903_v33 = vadd.f32 -1.0, %v266_v47 }
  0xb1   :  { %2839 = vst [vmem:[#allocation172_spill] sm:$0xff] %v1859_v53  ;;  %v819_v53 = vadd.f32 %v563_v55, %v555_v38  ;;  %v1883_v38 = vadd.f32 -1.0, %v258_v32  ;;  %v579_v55 = vand.u32 2147483647, %v1495_v63 }
  0xb2   :  { %2840 = vst [vmem:[#allocation173_spill] sm:$0xff] %v1863_v25  ;;  %v850_v25 = vadd.f32 %v564_v43, %v556_v50  ;;  %v267_v50 = vld [vmem:[#allocation3 + $0x700] sm:$0xff]  ;;  %v268_v43 = vld [vmem:[#allocation3 + $0x708] sm:$0xff] }
  0xb3   :  { %2841 = vst [vmem:[#allocation174_spill] sm:$0xff] %v1865_v15  ;;  %v263_v15 = vld [vmem:[#allocation3 + $0x6e0] sm:$0xff] }
  0xb4   :  { %2842 = vst [vmem:[#allocation175_spill] sm:$0xff] %v1867_v4  ;;  %v1877_v4 = vadd.f32 -1.0, %v255_v5  ;;  %v1889_v5 = vadd.f32 -1.0, %v260_v7  ;;  %v1895_v32 = vadd.f32 -1.0, %v263_v15  ;;  %v1901_v7 = vadd.f32 -1.0, %v265_v46  ;;  %v273_v15 = vld [vmem:[#allocation3 + $0x730] sm:$0xff] }
  0xb5   :  { %2843 = vst [vmem:[#allocation176_spill] sm:$0xff] %v1869_v58  ;;  %v1887_v58 = vadd.f32 -1.0, %v259_v29  ;;  %v588_v29 = vand.u32 2147483647, %v1513_v20  ;;  %v276_v20 = vld [vmem:[#allocation3 + $0x748] sm:$0xff] }
  0xb6   :  { %2844 = vst [vmem:[#allocation177_spill] sm:$0xff] %v1871_v16  ;;  %v820_v16 = vadd.f32 %v819_v53, %v571_v61  ;;  %v1893_v53 = vadd.f32 -1.0, %v262_v3  ;;  %v1897_v61 = vadd.f32 -1.0, %v264_v2  ;;  %v1907_v3 = vadd.f32 -1.0, %v268_v43  ;;  %v278_v43 = vld [vmem:[#allocation3 + $0x758] sm:$0xff] }
  0xb7   :  { %2845 = vst [vmem:[#allocation178_spill] sm:$0xff] %v1874_v45  ;;  %v851_v45 = vadd.f32 %v850_v25, %v572_v60  ;;  %v272_v25 = vld [vmem:[#allocation3 + $0x728] sm:$0xff]  ;;  %v587_v60 = vand.u32 2147483647, %v1511_v13  ;;  %v1909_v2 = vadd.f32 -1.0, %v269_v31 }
  0xb8   :  { %2846 = vst [vmem:[#allocation179_spill] sm:$0xff] %v1877_v4  ;;  %v821_v63 = vadd.f32 %v820_v16, %v579_v55  ;;  %v595_v55 = vand.u32 2147483647, %v1527_v48  ;;  %v1916_v46 = vadd.f32 -1.0, %v272_v25  ;;  %v565_v31 = vand.u32 2147483647, %v1467_v34 }
  0xb9   :  { %2847 = vst [vmem:[#allocation180_spill] sm:$0xff] %v1879_v41  ;;  %v603_v48 = vand.u32 2147483647, %v1543_v12  ;;  %v280_v25 = vld [vmem:[#allocation3 + $0x768] sm:$0xff]  ;;  %v573_v12 = vand.u32 2147483647, %v1483_v51 }
  0xba   :  { %2848 = vst [vmem:[#allocation181_spill] sm:$0xff] %v1881_v10  ;;  %v270_v10 = vld [vmem:[#allocation3 + $0x718] sm:$0xff]  ;;  %v822_v13 = vadd.f32 %v821_v63, %v587_v60  ;;  %v604_v63 = vand.u32 2147483647, %v1545_v8  ;;  %v281_v60 = vld [vmem:[#allocation3 + $0x770] sm:$0xff]  ;;  %v284_v34 = vld [vmem:[#allocation3 + $0x788] sm:$0xff] }
  0xbb   :  { %2849 = vst [vmem:[#allocation182_spill] sm:$0xff] %v1883_v38  ;;  %v1911_v16 = vadd.f32 -1.0, %v270_v10  ;;  %v285_v8 = vld [vmem:[#allocation3 + $0x790] sm:$0xff]  ;;  %v2928_v4 = vld [vmem:[#allocation85_spill] sm:$0xff] }
  0xbc   :  { %2850 = vst [vmem:[#allocation183_spill] sm:$0xff] %v1887_v58  ;;  %v852_v58 = vadd.f32 %v851_v45, %v580_v59  ;;  %v1914_v45 = vadd.f32 -1.0, %v271_v0  ;;  %v596_v59 = vand.u32 2147483647, %v1529_v49  ;;  %v823_v10 = vadd.f32 %v822_v13, %v595_v55  ;;  %v289_v51 = vld [vmem:[#allocation3 + $0x7b0] sm:$0xff]  ;;  %v2937_v41 = vld [vmem:[#allocation49_spill] sm:$0xff] }
  0xbd   :  { %2851 = vst [vmem:[#allocation184_spill] sm:$0xff] %v1889_v5  ;;  %v2925_v38 = vld [vmem:[#allocation43_spill] sm:$0xff] }
  0xbe   :  { %2852 = vst [vmem:[#allocation185_spill] sm:$0xff] %v1891_v11  ;;  %v1905_v11 = vadd.f32 -1.0, %v267_v50  ;;  %v853_v47 = vadd.f32 %v852_v58, %v588_v29  ;;  %v277_v50 = vld [vmem:[#allocation3 + $0x750] sm:$0xff]  ;;  %v1929_v29 = vadd.f32 -1.0, %v276_v20  ;;  %v824_v13 = vadd.f32 %v823_v10, %v603_v48  ;;  %v288_v20 = vld [vmem:[#allocation3 + $0x7a8] sm:$0xff]  ;;  %v290_v10 = vld [vmem:[#allocation3 + $0x7b8] sm:$0xff] }
  0xbf   :  { %2853 = vst [vmem:[#allocation186_spill] sm:$0xff] %v1893_v53  ;;  %v1931_v55 = vadd.f32 -1.0, %v277_v50  ;;  %v1942_v50 = vadd.f32 -1.0, %v281_v60  ;;  %v294_v60 = vld [vmem:[#allocation3 + $0x7d8] sm:$0xff]  ;;  %v2967_v53 = vld [vmem:[#allocation110_spill] sm:$0xff] }
  0xc0   :  { %2854 = vst [vmem:[#allocation187_spill] sm:$0xff] %v1895_v32  ;;  %v274_v32 = vld [vmem:[#allocation3 + $0x738] sm:$0xff]  ;;  %v854_v0 = vadd.f32 %v853_v47, %v596_v59  ;;  %v611_v47 = vand.u32 2147483647, %v1559_v30 }
  0xc1   :  { %2855 = vst [vmem:[#allocation188_spill] sm:$0xff] %v1897_v61  ;;  %v275_v61 = vld [vmem:[#allocation3 + $0x740] sm:$0xff]  ;;  %v1925_v49 = vadd.f32 -1.0, %v274_v32  ;;  %v286_v59 = vld [vmem:[#allocation3 + $0x798] sm:$0xff]  ;;  %v612_v32 = vand.u32 2147483647, %v1561_v6 }
  0xc2   :  { %2856 = vst [vmem:[#allocation189_spill] sm:$0xff] %v1901_v7  ;;  %v1927_v58 = vadd.f32 -1.0, %v275_v61  ;;  %v619_v6 = vand.u32 2147483647, %v1575_v62  ;;  %v825_v30 = vadd.f32 %v824_v13, %v611_v47  ;;  %v297_v62 = vld [vmem:[#allocation3 + $0x7f0] sm:$0xff]  ;;  %v1959_v13 = vadd.f32 -1.0, %v288_v20 }
  0xc3   :  { %2857 = vst [vmem:[#allocation190_spill] sm:$0xff] %v1903_v33  ;;  %v1961_v47 = vadd.f32 -1.0, %v289_v51  ;;  %v589_v51 = vand.u32 2147483647, %v1515_v24  ;;  %v2976_v7 = vld [vmem:[#allocation117_spill] sm:$0xff] }
  0xc4   :  { %2858 = vst [vmem:[#allocation191_spill] sm:$0xff] %v1905_v11  ;;  %v2919_v11 = vld [vmem:[#allocation78_spill] sm:$0xff] }
  0xc5   :  { %2859 = vst [vmem:[#allocation192_spill] sm:$0xff] %v1907_v3  ;;  %v557_v3 = vand.u32 2147483647, %v1451_v17  ;;  %v283_v17 = vld [vmem:[#allocation3 + $0x780] sm:$0xff] }
  0xc6   :  { %2860 = vst [vmem:[#allocation193_spill] sm:$0xff] %v1909_v2  ;;  %v1921_v2 = vadd.f32 -1.0, %v273_v15  ;;  %v1933_v15 = vadd.f32 -1.0, %v278_v43  ;;  %v1946_v48 = vadd.f32 -1.0, %v283_v17  ;;  %v581_v17 = vand.u32 2147483647, %v1499_v1 }
  0xc7   :  { %2861 = vst [vmem:[#allocation194_spill] sm:$0xff] %v1911_v16  ;;  %v279_v16 = vld [vmem:[#allocation3 + $0x760] sm:$0xff]  ;;  %v881_v61 = vadd.f32 %v565_v31, %v557_v3  ;;  %v292_v31 = vld [vmem:[#allocation3 + $0x7c8] sm:$0xff] }
  0xc8   :  { %2862 = vst [vmem:[#allocation195_spill] sm:$0xff] %v1914_v45  ;;  %v291_v3 = vld [vmem:[#allocation3 + $0x7c0] sm:$0xff] }
  0xc9   :  { %2863 = vst [vmem:[#allocation196_spill] sm:$0xff] %v1916_v46  ;;  %v282_v46 = vld [vmem:[#allocation3 + $0x778] sm:$0xff] }
  0xca   :  { %2864 = vst [vmem:[#allocation197_spill] sm:$0xff] %v1921_v2  ;;  %v1940_v2 = vadd.f32 -1.0, %v280_v25  ;;  %v1944_v43 = vadd.f32 -1.0, %v282_v46  ;;  %v293_v46 = vld [vmem:[#allocation3 + $0x7d0] sm:$0xff] }
  0xcb   :  { %2865 = vst [vmem:[#allocation198_spill] sm:$0xff] %v1925_v49  ;;  %v855_v49 = vadd.f32 %v854_v0, %v604_v63  ;;  %v1951_v63 = vadd.f32 -1.0, %v285_v8  ;;  %v620_v0 = vand.u32 2147483647, %v1577_v37  ;;  %v627_v8 = vand.u32 2147483647, %v1591_v57 }
  0xcc   :  { %2866 = vst [vmem:[#allocation199_spill] sm:$0xff] %v1927_v58  ;;  %v287_v58 = vld [vmem:[#allocation3 + $0x7a0] sm:$0xff]  ;;  %v1964_v37 = vadd.f32 -1.0, %v290_v10  ;;  %v1971_v1 = vadd.f32 -1.0, %v293_v46  ;;  %v1979_v57 = vadd.f32 -1.0, %v297_v62  ;;  %v2908_v62 = vld [vmem:[#allocation22_spill] sm:$0xff] }
  0xcd   :  { %2867 = vst [vmem:[#allocation200_spill] sm:$0xff] %v1929_v29  ;;  %v1938_v29 = vadd.f32 -1.0, %v279_v16  ;;  %v1953_v16 = vadd.f32 -1.0, %v286_v59  ;;  %v856_v25 = vadd.f32 %v855_v49, %v612_v32  ;;  %v826_v59 = vadd.f32 %v825_v30, %v619_v6  ;;  %v2931_v46 = vld [vmem:[#allocation86_spill] sm:$0xff]  ;;  %v3198_v36 = vld [vmem:[#allocation191_spill] sm:$0xff] }
  0xce   :  { %2868 = vst [vmem:[#allocation201_spill] sm:$0xff] %v1931_v55  ;;  %v1966_v49 = vadd.f32 -1.0, %v291_v3  ;;  %v635_v30 = vand.u32 2147483647, %v1607_v18  ;;  %v597_v18 = vand.u32 2147483647, %v1531_v56 }
  0xcf   :  { %2869 = vst [vmem:[#allocation202_spill] sm:$0xff] %v1933_v15  ;;  %v1948_v15 = vadd.f32 -1.0, %v284_v34  ;;  %v882_v34 = vadd.f32 %v881_v61, %v573_v12  ;;  %v857_v32 = vadd.f32 %v856_v25, %v620_v0  ;;  %v1973_v12 = vadd.f32 -1.0, %v294_v60  ;;  %v2892_v0 = vld [vmem:[#allocation61_spill] sm:$0xff]  ;;  %v2897_v60 = vld [vmem:[#allocation14_spill] sm:$0xff]  ;;  %v2898_v56 = vld [vmem:[#allocation15_spill] sm:$0xff] }
  0xd0   :  { %2870 = vst [vmem:[#allocation203_spill] sm:$0xff] %v1938_v29  ;;  %v827_v3 = vadd.f32 %v826_v59, %v627_v8  ;;  %v2891_v8 = vld [vmem:[#allocation10_spill] sm:$0xff]  ;;  %v2909_v59 = vld [vmem:[#allocation23_spill] sm:$0xff]  ;;  %v2916_v55 = vld [vmem:[#allocation77_spill] sm:$0xff] }
  0xd1   :  { %2871 = vst [vmem:[#allocation204_spill] sm:$0xff] %v1940_v2  ;;  %v296_v2 = vld [vmem:[#allocation3 + $0x7e8] sm:$0xff]  ;;  %v883_v10 = vadd.f32 %v882_v34, %v581_v17  ;;  %v2890_v34 = vld [vmem:[#allocation9_spill] sm:$0xff] }
  0xd2   :  { %2872 = vst [vmem:[#allocation205_spill] sm:$0xff] %v1942_v50  ;;  %v1956_v50 = vadd.f32 -1.0, %v287_v58  ;;  %v628_v58 = vand.u32 2147483647, %v1593_v19  ;;  %v1977_v20 = vadd.f32 -1.0, %v296_v2  ;;  %v2895_v19 = vld [vmem:[#allocation62_spill] sm:$0xff] }
  0xd3   :  { %2873 = vst [vmem:[#allocation206_spill] sm:$0xff] %v1944_v43  ;;  %v295_v43 = vld [vmem:[#allocation3 + $0x7e0] sm:$0xff]  ;;  %v884_v17 = vadd.f32 %v883_v10, %v589_v51  ;;  %v644_v24 = vand.u32 2147483647, %v2895_v19  ;;  %v2899_v10 = vld [vmem:[#allocation16_spill] sm:$0xff] }
  0xd4   :  { %2874 = vst [vmem:[#allocation207_spill] sm:$0xff] %v1946_v48  ;;  %v1975_v61 = vadd.f32 -1.0, %v295_v43  ;;  %v636_v43 = vand.u32 2147483647, %v1609_v52  ;;  %v858_v2 = vadd.f32 %v857_v32, %v628_v58  ;;  %v643_v52 = vand.u32 2147483647, %v2892_v0 }
  0xd5   :  { %2875 = vst [vmem:[#allocation208_spill] sm:$0xff] %v1948_v15  ;;  %v828_v58 = vadd.f32 %v827_v3, %v635_v30  ;;  %v2893_v32 = vld [vmem:[#allocation11_spill] sm:$0xff]  ;;  %v885_v30 = vadd.f32 %v884_v17, %v597_v18  ;;  %v2902_v3 = vld [vmem:[#allocation18_spill] sm:$0xff]  ;;  %v2911_v17 = vld [vmem:[#allocation25_spill] sm:$0xff]  ;;  %v660_v18 = vand.u32 2147483647, %v2919_v11 }
  0xd6   :  { %2876 = vst [vmem:[#allocation209_spill] sm:$0xff] %v1951_v63  ;;  %v2912_v63 = vld [vmem:[#allocation26_spill] sm:$0xff]  ;;  %v2913_v15 = vld [vmem:[#allocation37_spill] sm:$0xff]  ;;  %v667_v11 = vand.u32 2147483647, %v2928_v4 }
  0xd7   :  { %2877 = vst [vmem:[#allocation210_spill] sm:$0xff] %v1953_v16  ;;  %v298_v16 = vld [vmem:[#allocation3 + $0x7f8] sm:$0xff]  ;;  %v629_v4 = vand.u32 2147483647, %v2937_v41  ;;  %v2940_v25 = vld [vmem:[#allocation93_spill] sm:$0xff]  ;;  %v2946_v41 = vld [vmem:[#allocation55_spill] sm:$0xff] }
  0xd8   :  { %2878 = vst [vmem:[#allocation211_spill] sm:$0xff] %v1956_v50  ;;  %v1969_v50 = vadd.f32 -1.0, %v292_v31  ;;  %v1982_v6 = vadd.f32 -1.0, %v298_v16  ;;  %v2894_v31 = vld [vmem:[#allocation12_spill] sm:$0xff]  ;;  %v2896_v16 = vld [vmem:[#allocation13_spill] sm:$0xff] }
  0xd9   :  { %2879 = vst [vmem:[#allocation212_spill] sm:$0xff] %v1959_v13  ;;  %v2906_v13 = vld [vmem:[#allocation21_spill] sm:$0xff] }
  0xda   :  { %2880 = vst [vmem:[#allocation213_spill] sm:$0xff] %v1961_v47  ;;  %v2904_v47 = vld [vmem:[#allocation69_spill] sm:$0xff] }
  0xdb   :  { %2881 = vst [vmem:[#allocation214_spill] sm:$0xff] %v1964_v37  ;;  %v2900_v37 = vld [vmem:[#allocation17_spill] sm:$0xff]  ;;  %v651_v19 = vand.u32 2147483647, %v2904_v47  ;;  %v613_v47 = vand.u32 2147483647, %v2913_v15 }
  0xdc   :  { %2882 = vst [vmem:[#allocation215_spill] sm:$0xff] %v1966_v49  ;;  %v2955_v49 = vld [vmem:[#allocation102_spill] sm:$0xff] }
  0xdd   :  { %2883 = vst [vmem:[#allocation216_spill] sm:$0xff] %v1969_v50  ;;  %v2964_v50 = vld [vmem:[#allocation109_spill] sm:$0xff] }
  0xde   :  { %2884 = vst [vmem:[#allocation217_spill] sm:$0xff] %v1971_v1  ;;  %v2907_v1 = vld [vmem:[#allocation70_spill] sm:$0xff] }
  0xdf   :  { %2885 = vst [vmem:[#allocation218_spill] sm:$0xff] %v1973_v12  ;;  %v2903_v12 = vld [vmem:[#allocation19_spill] sm:$0xff]  ;;  %v652_v51 = vand.u32 2147483647, %v2907_v1  ;;  %v659_v1 = vand.u32 2147483647, %v2916_v55 }
  0xe0   :  { %2886 = vst [vmem:[#allocation219_spill] sm:$0xff] %v1975_v61  ;;  %v2901_v61 = vld [vmem:[#allocation31_spill] sm:$0xff]  ;;  %v621_v55 = vand.u32 2147483647, %v2925_v38 }
  0xe1   :  { %2887 = vst [vmem:[#allocation220_spill] sm:$0xff] %v1977_v20  ;;  %v605_v0 = vand.u32 2147483647, %v2901_v61  ;;  %v2910_v61 = vld [vmem:[#allocation24_spill] sm:$0xff]  ;;  %v2943_v20 = vld [vmem:[#allocation94_spill] sm:$0xff] }
  0xe2   :  { %2888 = vst [vmem:[#allocation221_spill] sm:$0xff] %v1979_v57  ;;  %v2952_v57 = vld [vmem:[#allocation101_spill] sm:$0xff] }
  0xe3   :  { %2889 = vst [vmem:[#allocation222_spill] sm:$0xff] %v1982_v6  ;;  %v859_v6 = vadd.f32 %v858_v2, %v636_v43  ;;  %v829_v43 = vadd.f32 %v828_v58, %v643_v52  ;;  %v2905_v2 = vld [vmem:[#allocation20_spill] sm:$0xff]  ;;  %v886_v52 = vadd.f32 %v885_v30, %v605_v0  ;;  %v668_v0 = vand.u32 2147483647, %v2931_v46  ;;  %v2968_v30 = vld [vmem:[#allocation79_spill] sm:$0xff]  ;;  %v3039_v58 = vld [vmem:[#allocation158_spill] sm:$0xff] }
  0xe4   :  { %v675_v46 = vand.u32 2147483647, %v2940_v25 }
  0xe5   :  { %v860_v29 = vadd.f32 %v859_v6, %v644_v24  ;;  %v830_v6 = vadd.f32 %v829_v43, %v651_v19  ;;  %v887_v19 = vadd.f32 %v886_v52, %v613_v47  ;;  %v676_v47 = vand.u32 2147483647, %v2943_v20  ;;  %v2991_v43 = vld [vmem:[#allocation126_spill] sm:$0xff] }
  0xe6   :  { %v683_v20 = vand.u32 2147483647, %v2952_v57 }
  0xe7   :  { %v861_v33 = vadd.f32 %v860_v29, %v652_v51  ;;  %v831_v29 = vadd.f32 %v830_v6, %v659_v1  ;;  %v888_v1 = vadd.f32 %v887_v19, %v621_v55  ;;  %v637_v55 = vand.u32 2147483647, %v2946_v41  ;;  %v3003_v6 = vld [vmem:[#allocation134_spill] sm:$0xff]  ;;  %v3038_v51 = vld [vmem:[#allocation157_spill] sm:$0xff] }
  0xe8   :  { %v684_v41 = vand.u32 2147483647, %v2955_v49  ;;  %v691_v49 = vand.u32 2147483647, %v2964_v50  ;;  %v2982_v50 = vld [vmem:[#allocation95_spill] sm:$0xff] }
  0xe9   :  { %v862_v15 = vadd.f32 %v861_v33, %v660_v18  ;;  %v832_v33 = vadd.f32 %v831_v29, %v667_v11  ;;  %v889_v11 = vadd.f32 %v888_v1, %v629_v4  ;;  %v2960_v29 = vld [vmem:[#allocation71_spill] sm:$0xff]  ;;  %v692_v4 = vand.u32 2147483647, %v2967_v53  ;;  %v2988_v18 = vld [vmem:[#allocation125_spill] sm:$0xff] }
  0xea   :  { %v653_v5 = vand.u32 2147483647, %v2960_v29  ;;  %v661_v1 = vand.u32 2147483647, %v2968_v30  ;;  %v699_v53 = vand.u32 2147483647, %v2976_v7 }
  0xeb   :  { %v863_v38 = vadd.f32 %v862_v15, %v668_v0  ;;  %v833_v15 = vadd.f32 %v832_v33, %v675_v46  ;;  %v2953_v0 = vld [vmem:[#allocation63_spill] sm:$0xff]  ;;  %v890_v46 = vadd.f32 %v889_v11, %v637_v55  ;;  %v2979_v29 = vld [vmem:[#allocation118_spill] sm:$0xff] }
  0xec   :  { %v645_v52 = vand.u32 2147483647, %v2953_v0  ;;  %v700_v55 = vand.u32 2147483647, %v2979_v29  ;;  %v707_v29 = vand.u32 2147483647, %v2988_v18 }
  0xed   :  { %v864_v45 = vadd.f32 %v863_v38, %v676_v47  ;;  %v834_v38 = vadd.f32 %v833_v15, %v683_v20  ;;  %v2974_v15 = vld [vmem:[#allocation87_spill] sm:$0xff]  ;;  %v3000_v0 = vld [vmem:[#allocation133_spill] sm:$0xff]  ;;  %v3027_v33 = vld [vmem:[#allocation150_spill] sm:$0xff]  ;;  %v748_v47 = vand.u32 2147483647, %v1833_v44 }
  0xee   :  { %v891_v20 = vadd.f32 %v890_v46, %v645_v52  ;;  %v669_v19 = vand.u32 2147483647, %v2974_v15  ;;  %v677_v52 = vand.u32 2147483647, %v2982_v50  ;;  %v708_v50 = vand.u32 2147483647, %v2991_v43 }
  0xef   :  { %v865_v25 = vadd.f32 %v864_v45, %v684_v41  ;;  %v835_v45 = vadd.f32 %v834_v38, %v691_v49  ;;  %v2996_v38 = vld [vmem:[#allocation111_spill] sm:$0xff]  ;;  %v715_v43 = vand.u32 2147483647, %v3000_v0  ;;  %v3012_v15 = vld [vmem:[#allocation141_spill] sm:$0xff]  ;;  %v3044_v46 = vld [vmem:[#allocation164_spill] sm:$0xff] }
  0xf0   :  { %v892_v49 = vadd.f32 %v891_v20, %v653_v5  ;;  %v693_v24 = vand.u32 2147483647, %v2996_v38  ;;  %v716_v5 = vand.u32 2147483647, %v3003_v6  ;;  %v3004_v30 = vld [vmem:[#allocation119_spill] sm:$0xff]  ;;  %v3015_v38 = vld [vmem:[#allocation142_spill] sm:$0xff] }
  0xf1   :  { %v866_v57 = vadd.f32 %v865_v25, %v692_v4  ;;  %v836_v25 = vadd.f32 %v835_v45, %v699_v53  ;;  %v2989_v4 = vld [vmem:[#allocation103_spill] sm:$0xff]  ;;  %v723_v6 = vand.u32 2147483647, %v3012_v15  ;;  %v3024_v41 = vld [vmem:[#allocation149_spill] sm:$0xff]  ;;  %v3046_v45 = vand.u32 2147483647, %v1453_v21 }
  0xf2   :  { %v685_v11 = vand.u32 2147483647, %v2989_v4  ;;  %v893_v53 = vadd.f32 %v892_v49, %v661_v1  ;;  %v724_v1 = vand.u32 2147483647, %v3015_v38  ;;  %v731_v38 = vand.u32 2147483647, %v3024_v41 }
  0xf3   :  { %v867_v48 = vadd.f32 %v866_v57, %v700_v55  ;;  %v837_v57 = vadd.f32 %v836_v25, %v707_v29  ;;  %v3010_v25 = vld [vmem:[#allocation127_spill] sm:$0xff]  ;;  %v3026_v4 = vld [vmem:[#allocation144_spill] sm:$0xff]  ;;  %v3035_v55 = vld [vmem:[#allocation154_spill] sm:$0xff]  ;;  %v3049_v44 = vand.u32 2147483647, %v1471_v39 }
  0xf4   :  { %v894_v29 = vadd.f32 %v893_v53, %v669_v19  ;;  %v732_v19 = vand.u32 2147483647, %v3027_v33  ;;  %v739_v33 = vand.u32 2147483647, %v1815_v26  ;;  %v3041_v49 = vld [vmem:[#allocation161_spill] sm:$0xff]  ;;  %v3052_v20 = vld [vmem:[#allocation166_spill] sm:$0xff] }
  0xf5   :  { %v868_v7 = vadd.f32 %v867_v48, %v708_v50  ;;  %v838_v48 = vadd.f32 %v837_v57, %v715_v43  ;;  %v3032_v57 = vld [vmem:[#allocation151_spill] sm:$0xff]  ;;  %v3033_v50 = vld [vmem:[#allocation152_spill] sm:$0xff]  ;;  %v3054_v21 = vand.u32 2147483647, %v1459_v27  ;;  %v3057_v39 = vand.u32 2147483647, %v2891_v8 }
  0xf6   :  { %v895_v43 = vadd.f32 %v894_v29, %v677_v52  ;;  %v740_v52 = vand.u32 2147483647, %v3038_v51  ;;  %v749_v51 = vand.u32 2147483647, %v1835_v9  ;;  %v3064_v8 = vand.u32 2147483647, %v2898_v56 }
  0xf7   :  { %v869_v18 = vadd.f32 %v868_v7, %v716_v5  ;;  %v839_v7 = vadd.f32 %v838_v48, %v723_v6  ;;  %v3025_v5 = vld [vmem:[#allocation143_spill] sm:$0xff]  ;;  %v3034_v48 = vld [vmem:[#allocation153_spill] sm:$0xff]  ;;  %v3071_v56 = vand.u32 2147483647, %v2905_v2  ;;  %v3079_v2 = vand.u32 2147483647, %v2911_v17 }
  0xf8   :  { %v896_v6 = vadd.f32 %v895_v43, %v685_v11  ;;  %v3045_v43 = vld [vmem:[#allocation165_spill] sm:$0xff]  ;;  %v3199_v9 = vld [vmem:[#allocation192_spill] sm:$0xff] }
  0xf9   :  { %v870_v0 = vadd.f32 %v869_v18, %v724_v1  ;;  %v840_v18 = vadd.f32 %v839_v7, %v731_v38  ;;  %v3036_v1 = vld [vmem:[#allocation155_spill] sm:$0xff]  ;;  %v3042_v7 = vld [vmem:[#allocation162_spill] sm:$0xff] }
  0xfa   :  { %v897_v38 = vadd.f32 %v896_v6, %v693_v24  ;;  %v747_v53 = vand.u32 2147483647, %v3042_v7  ;;  %v3047_v24 = vand.u32 2147483647, %v1469_v35  ;;  %v3048_v7 = vand.u32 2147483647, %v1455_v22 }
  0xfb   :  { %v871_v15 = vadd.f32 %v870_v0, %v732_v19  ;;  %v841_v0 = vadd.f32 %v840_v18, %v739_v33  ;;  %v3043_v19 = vld [vmem:[#allocation163_spill] sm:$0xff]  ;;  %v3050_v33 = vand.u32 2147483647, %v1457_v23  ;;  %v3051_v18 = vand.u32 2147483647, %v1473_v40 }
  0xfc   :  { %v912_v6 = vadd.f32 %v3047_v24, %v3046_v45  ;;  %v943_v26 = vadd.f32 %v3049_v44, %v3048_v7  ;;  %v3055_v35 = vand.u32 2147483647, %v2890_v34  ;;  %v3056_v22 = vand.u32 2147483647, %v1461_v28 }
  0xfd   :  { %v872_v41 = vadd.f32 %v871_v15, %v740_v52  ;;  %v974_v29 = vadd.f32 %v3051_v18, %v3050_v33  ;;  %v3053_v15 = vand.u32 2147483647, %v3004_v30  ;;  %v842_v7 = vadd.f32 %v841_v0, %v747_v53  ;;  %v3061_v18 = vld [vmem:[#allocation167_spill] sm:$0xff]  ;;  %v3065_v53 = vld [vmem:[#allocation169_spill] sm:$0xff] }
  0xfe   :  { %v1005_v45 = vadd.f32 %v3055_v35, %v3054_v21  ;;  %v1036_v24 = vadd.f32 %v3057_v39, %v3056_v22  ;;  %v3058_v23 = vand.u32 2147483647, %v2893_v32  ;;  %v3059_v44 = vand.u32 2147483647, %v2894_v31 }
  0xff   :  { %v898_v52 = vadd.f32 %v897_v38, %v3053_v15  ;;  %v3060_v30 = vand.u32 2147483647, %v2896_v16  ;;  %v755_v27 = vand.u32 2147483647, %v3061_v18  ;;  %v3062_v15 = vld [vmem:[#allocation168_spill] sm:$0xff]  ;;  %v873_v22 = vadd.f32 %v872_v41, %v748_v47  ;;  %v3076_v41 = vld [vmem:[#allocation171_spill] sm:$0xff] }
 0x100   :  { %v913_v40 = vadd.f32 %v912_v6, %v3058_v23  ;;  %v944_v33 = vadd.f32 %v943_v26, %v3059_v44  ;;  %v756_v34 = vand.u32 2147483647, %v3062_v15  ;;  %v3063_v21 = vand.u32 2147483647, %v2897_v60  ;;  %v3072_v44 = vld [vmem:[#allocation170_spill] sm:$0xff] }
 0x101   :  { %v975_v38 = vadd.f32 %v974_v29, %v3060_v30  ;;  %v1037_v35 = vadd.f32 %v1036_v24, %v3064_v8  ;;  %v757_v0 = vand.u32 2147483647, %v3065_v53  ;;  %v3066_v32 = vand.u32 2147483647, %v2899_v10  ;;  %v3174_v30 = vld [vmem:[#allocation187_spill] sm:$0xff]  ;;  %v3248_v53 = vld [vmem:[#allocation200_spill] sm:$0xff] }
 0x102   :  { %v1006_v28 = vadd.f32 %v1005_v45, %v3063_v21  ;;  %v3067_v31 = vand.u32 2147483647, %v2900_v37  ;;  %v3068_v16 = vand.u32 2147483647, %v2902_v3  ;;  %v3069_v39 = vand.u32 2147483647, %v3010_v25 }
 0x103   :  { %v914_v6 = vadd.f32 %v913_v40, %v3066_v32  ;;  %v3070_v60 = vand.u32 2147483647, %v2903_v12  ;;  %v1038_v24 = vadd.f32 %v1037_v35, %v3071_v56  ;;  %v3073_v10 = vand.u32 2147483647, %v2906_v13  ;;  %v3080_v21 = vld [vmem:[#allocation173_spill] sm:$0xff]  ;;  %v3091_v56 = vld [vmem:[#allocation30_spill] sm:$0xff] }
 0x104   :  { %v945_v26 = vadd.f32 %v944_v33, %v3067_v31  ;;  %v976_v29 = vadd.f32 %v975_v38, %v3068_v16  ;;  %v899_v23 = vadd.f32 %v898_v52, %v3069_v39  ;;  %v3074_v37 = vand.u32 2147483647, %v2908_v62  ;;  %v3077_v52 = vld [vmem:[#allocation172_spill] sm:$0xff]  ;;  %v3082_v62 = vld [vmem:[#allocation27_spill] sm:$0xff] }
 0x105   :  { %v1007_v45 = vadd.f32 %v1006_v28, %v3070_v60  ;;  %v915_v40 = vadd.f32 %v914_v6, %v3073_v10  ;;  %v3075_v3 = vand.u32 2147483647, %v2909_v59  ;;  %v3078_v12 = vand.u32 2147483647, %v2910_v61  ;;  %v3084_v59 = vld [vmem:[#allocation28_spill] sm:$0xff]  ;;  %v3089_v60 = vld [vmem:[#allocation29_spill] sm:$0xff] }
 0x106   :  { %v946_v33 = vadd.f32 %v945_v26, %v3074_v37  ;;  %v1039_v15 = vadd.f32 %v1038_v24, %v3079_v2  ;;  %v3081_v13 = vand.u32 2147483647, %v2912_v63  ;;  %v3083_v35 = vand.u32 2147483647, %v3082_v62  ;;  %v3086_v26 = vld [vmem:[#allocation174_spill] sm:$0xff]  ;;  %v3093_v37 = vld [vmem:[#allocation175_spill] sm:$0xff] }
 0x107   :  { %v977_v47 = vadd.f32 %v976_v29, %v3075_v3  ;;  %v1008_v18 = vadd.f32 %v1007_v45, %v3078_v12  ;;  %v3085_v6 = vand.u32 2147483647, %v3084_v59  ;;  %v3087_v29 = vld [vmem:[#allocation135_spill] sm:$0xff]  ;;  %v3090_v45 = vand.u32 2147483647, %v3089_v60  ;;  %v3100_v59 = vld [vmem:[#allocation176_spill] sm:$0xff] }
 0x108   :  { %v916_v8 = vadd.f32 %v915_v40, %v3081_v13  ;;  %v947_v32 = vadd.f32 %v946_v33, %v3083_v35  ;;  %v3088_v39 = vand.u32 2147483647, %v3087_v29  ;;  %v3092_v24 = vand.u32 2147483647, %v3091_v56  ;;  %v3094_v40 = vld [vmem:[#allocation32_spill] sm:$0xff]  ;;  %v3096_v33 = vld [vmem:[#allocation33_spill] sm:$0xff] }
 0x109   :  { %v978_v31 = vadd.f32 %v977_v47, %v3085_v6  ;;  %v1009_v17 = vadd.f32 %v1008_v18, %v3090_v45  ;;  %v763_v63 = vand.u32 2147483647, %v3093_v37  ;;  %v3095_v3 = vand.u32 2147483647, %v3094_v40  ;;  %v3098_v47 = vld [vmem:[#allocation34_spill] sm:$0xff]  ;;  %v3101_v29 = vld [vmem:[#allocation35_spill] sm:$0xff] }
 0x10a   :  { %v900_v61 = vadd.f32 %v899_v23, %v3088_v39  ;;  %v1040_v10 = vadd.f32 %v1039_v15, %v3092_v24  ;;  %v3097_v2 = vand.u32 2147483647, %v3096_v33  ;;  %v3099_v62 = vand.u32 2147483647, %v3098_v47  ;;  %v3103_v60 = vld [vmem:[#allocation36_spill] sm:$0xff]  ;;  %v3105_v56 = vld [vmem:[#allocation177_spill] sm:$0xff] }
 0x10b   :  { %v917_v12 = vadd.f32 %v916_v8, %v3095_v3  ;;  %v764_v6 = vand.u32 2147483647, %v3100_v59  ;;  %v843_v23 = vadd.f32 %v842_v7, %v755_v27  ;;  %v3102_v39 = vand.u32 2147483647, %v3101_v29  ;;  %v3106_v37 = vld [vmem:[#allocation38_spill] sm:$0xff]  ;;  %v3108_v3 = vld [vmem:[#allocation39_spill] sm:$0xff] }
 0x10c   :  { %v948_v13 = vadd.f32 %v947_v32, %v3097_v2  ;;  %v979_v35 = vadd.f32 %v978_v31, %v3099_v62  ;;  %v3104_v45 = vand.u32 2147483647, %v3103_v60  ;;  %v3107_v40 = vand.u32 2147483647, %v3106_v37  ;;  %v3110_v2 = vld [vmem:[#allocation40_spill] sm:$0xff]  ;;  %v3112_v62 = vld [vmem:[#allocation178_spill] sm:$0xff] }
 0x10d   :  { %v1010_v18 = vadd.f32 %v1009_v17, %v3102_v39  ;;  %v3109_v33 = vand.u32 2147483647, %v3108_v3  ;;  %v3111_v47 = vand.u32 2147483647, %v3110_v2  ;;  %v3113_v7 = vand.u32 2147483647, %v3025_v5 }
 0x10e   :  { %v1041_v15 = vadd.f32 %v1040_v10, %v3104_v45  ;;  %v918_v8 = vadd.f32 %v917_v12, %v3107_v40  ;;  %v3114_v17 = vld [vmem:[#allocation41_spill] sm:$0xff]  ;;  %v3116_v10 = vld [vmem:[#allocation42_spill] sm:$0xff]  ;;  %v874_v16 = vadd.f32 %v873_v22, %v756_v34  ;;  %v3118_v37 = vld [vmem:[#allocation44_spill] sm:$0xff] }
 0x10f   :  { %v949_v32 = vadd.f32 %v948_v13, %v3109_v33  ;;  %v980_v31 = vadd.f32 %v979_v35, %v3111_v47  ;;  %v901_v27 = vadd.f32 %v900_v61, %v3113_v7  ;;  %v3115_v29 = vand.u32 2147483647, %v3114_v17  ;;  %v3120_v3 = vld [vmem:[#allocation45_spill] sm:$0xff]  ;;  %v3122_v2 = vld [vmem:[#allocation46_spill] sm:$0xff]  ;;  %v3124_v59 = vld [vmem:[#allocation179_spill] sm:$0xff] }
 0x110   :  { %v3117_v60 = vand.u32 2147483647, %v3116_v10  ;;  %v3119_v12 = vand.u32 2147483647, %v3118_v37  ;;  %v3121_v13 = vand.u32 2147483647, %v3120_v3 }
 0x111   :  { %v1011_v39 = vadd.f32 %v1010_v18, %v3115_v29  ;;  %v3123_v35 = vand.u32 2147483647, %v3122_v2  ;;  %v3125_v5 = vld [vmem:[#allocation180_spill] sm:$0xff]  ;;  %v3126_v7 = vld [vmem:[#allocation47_spill] sm:$0xff]  ;;  %v3130_v34 = vld [vmem:[#allocation181_spill] sm:$0xff] }
 0x112   :  { %v1042_v45 = vadd.f32 %v1041_v15, %v3117_v60  ;;  %v919_v40 = vadd.f32 %v918_v8, %v3119_v12  ;;  %v950_v33 = vadd.f32 %v949_v32, %v3121_v13  ;;  %v3127_v17 = vand.u32 2147483647, %v3126_v7  ;;  %v3128_v29 = vld [vmem:[#allocation48_spill] sm:$0xff]  ;;  %v3131_v60 = vld [vmem:[#allocation50_spill] sm:$0xff]  ;;  %v3133_v12 = vld [vmem:[#allocation51_spill] sm:$0xff] }
 0x113   :  { %v981_v47 = vadd.f32 %v980_v31, %v3123_v35  ;;  %v3129_v10 = vand.u32 2147483647, %v3128_v29  ;;  %v3132_v8 = vand.u32 2147483647, %v3131_v60  ;;  %v3134_v32 = vand.u32 2147483647, %v3133_v12 }
 0x114   :  { %v1012_v18 = vadd.f32 %v1011_v39, %v3127_v17  ;;  %v3135_v13 = vld [vmem:[#allocation52_spill] sm:$0xff]  ;;  %v844_v35 = vadd.f32 %v843_v23, %v763_v63  ;;  %v3137_v61 = vand.u32 2147483647, %v3032_v57  ;;  %v3138_v7 = vld [vmem:[#allocation53_spill] sm:$0xff]  ;;  %v3140_v29 = vld [vmem:[#allocation54_spill] sm:$0xff] }
 0x115   :  { %v1043_v15 = vadd.f32 %v1042_v45, %v3129_v10  ;;  %v920_v37 = vadd.f32 %v919_v40, %v3132_v8  ;;  %v951_v3 = vadd.f32 %v950_v33, %v3134_v32  ;;  %v3136_v31 = vand.u32 2147483647, %v3135_v13  ;;  %v3142_v22 = vld [vmem:[#allocation182_spill] sm:$0xff]  ;;  %v3143_v60 = vld [vmem:[#allocation56_spill] sm:$0xff]  ;;  %v3145_v12 = vld [vmem:[#allocation57_spill] sm:$0xff] }
 0x116   :  { %v902_v28 = vadd.f32 %v901_v27, %v3137_v61  ;;  %v3139_v39 = vand.u32 2147483647, %v3138_v7  ;;  %v3141_v45 = vand.u32 2147483647, %v3140_v29  ;;  %v3144_v40 = vand.u32 2147483647, %v3143_v60 }
 0x117   :  { %v982_v2 = vadd.f32 %v981_v47, %v3136_v31  ;;  %v3146_v33 = vand.u32 2147483647, %v3145_v12  ;;  %v3147_v13 = vld [vmem:[#allocation58_spill] sm:$0xff]  ;;  %v3149_v23 = vld [vmem:[#allocation183_spill] sm:$0xff]  ;;  %v3150_v27 = vld [vmem:[#allocation184_spill] sm:$0xff] }
 0x118   :  { %v1013_v17 = vadd.f32 %v1012_v18, %v3139_v39  ;;  %v1044_v10 = vadd.f32 %v1043_v15, %v3141_v45  ;;  %v921_v8 = vadd.f32 %v920_v37, %v3144_v40  ;;  %v3148_v47 = vand.u32 2147483647, %v3147_v13  ;;  %v3151_v31 = vld [vmem:[#allocation59_spill] sm:$0xff]  ;;  %v3153_v39 = vld [vmem:[#allocation60_spill] sm:$0xff]  ;;  %v3157_v40 = vld [vmem:[#allocation65_spill] sm:$0xff] }
 0x119   :  { %v952_v32 = vadd.f32 %v951_v3, %v3146_v33  ;;  %v771_v57 = vand.u32 2147483647, %v3149_v23  ;;  %v772_v61 = vand.u32 2147483647, %v3150_v27  ;;  %v3152_v18 = vand.u32 2147483647, %v3151_v31 }
 0x11a   :  { %v983_v63 = vadd.f32 %v982_v2, %v3148_v47  ;;  %v3154_v15 = vand.u32 2147483647, %v3153_v39  ;;  %v875_v45 = vadd.f32 %v874_v16, %v764_v6  ;;  %v3155_v38 = vld [vmem:[#allocation64_spill] sm:$0xff]  ;;  %v3158_v12 = vand.u32 2147483647, %v3157_v40  ;;  %v3159_v33 = vld [vmem:[#allocation66_spill] sm:$0xff] }
 0x11b   :  { %v1014_v7 = vadd.f32 %v1013_v17, %v3152_v18  ;;  %v3156_v60 = vand.u32 2147483647, %v3155_v38  ;;  %v3160_v13 = vand.u32 2147483647, %v3159_v33  ;;  %v3161_v47 = vld [vmem:[#allocation185_spill] sm:$0xff]  ;;  %v3163_v31 = vld [vmem:[#allocation67_spill] sm:$0xff] }
 0x11c   :  { %v1045_v29 = vadd.f32 %v1044_v10, %v3154_v15  ;;  %v953_v3 = vadd.f32 %v952_v32, %v3158_v12  ;;  %v3162_v27 = vand.u32 2147483647, %v1819_v42  ;;  %v3164_v17 = vand.u32 2147483647, %v3163_v31  ;;  %v3165_v39 = vld [vmem:[#allocation68_spill] sm:$0xff]  ;;  %v3167_v6 = vld [vmem:[#allocation186_spill] sm:$0xff] }
 0x11d   :  { %v922_v37 = vadd.f32 %v921_v8, %v3156_v60  ;;  %v984_v2 = vadd.f32 %v983_v63, %v3160_v13  ;;  %v3166_v10 = vand.u32 2147483647, %v3165_v39  ;;  %v3168_v8 = vld [vmem:[#allocation72_spill] sm:$0xff]  ;;  %v3170_v32 = vld [vmem:[#allocation73_spill] sm:$0xff]  ;;  %v3172_v63 = vld [vmem:[#allocation74_spill] sm:$0xff] }
 0x11e   :  { %v903_v25 = vadd.f32 %v902_v28, %v3162_v27  ;;  %v1015_v18 = vadd.f32 %v1014_v7, %v3164_v17  ;;  %v3169_v15 = vand.u32 2147483647, %v3168_v8  ;;  %v3171_v40 = vand.u32 2147483647, %v3170_v32  ;;  %v3175_v28 = vld [vmem:[#allocation188_spill] sm:$0xff]  ;;  %v3176_v31 = vld [vmem:[#allocation75_spill] sm:$0xff] }
 0x11f   :  { %v1046_v16 = vadd.f32 %v1045_v29, %v3166_v10  ;;  %v3173_v33 = vand.u32 2147483647, %v3172_v63  ;;  %v3177_v7 = vand.u32 2147483647, %v3176_v31  ;;  %v3178_v39 = vld [vmem:[#allocation76_spill] sm:$0xff]  ;;  %v3180_v38 = vld [vmem:[#allocation189_spill] sm:$0xff]  ;;  %v845_v27 = vadd.f32 %v844_v35, %v771_v57 }
 0x120   :  { %v923_v60 = vadd.f32 %v922_v37, %v3169_v15  ;;  %v954_v12 = vadd.f32 %v953_v3, %v3171_v40  ;;  %v3179_v29 = vand.u32 2147483647, %v3178_v39  ;;  %v3181_v8 = vld [vmem:[#allocation80_spill] sm:$0xff]  ;;  %v3183_v32 = vld [vmem:[#allocation81_spill] sm:$0xff]  ;;  %v3185_v63 = vld [vmem:[#allocation82_spill] sm:$0xff]  ;;  %v904_v31 = vadd.f32 %v903_v25, %v749_v51 }
 0x121   :  { %v985_v13 = vadd.f32 %v984_v2, %v3173_v33  ;;  %v1016_v17 = vadd.f32 %v1015_v18, %v3177_v7  ;;  %v3182_v37 = vand.u32 2147483647, %v3181_v8  ;;  %v3184_v3 = vand.u32 2147483647, %v3183_v32  ;;  %v3187_v42 = vld [vmem:[#allocation190_spill] sm:$0xff]  ;;  %v3188_v18 = vld [vmem:[#allocation83_spill] sm:$0xff] }
 0x122   :  { %v1047_v10 = vadd.f32 %v1046_v16, %v3179_v29  ;;  %v3186_v2 = vand.u32 2147483647, %v3185_v63  ;;  %v3189_v7 = vand.u32 2147483647, %v3188_v18  ;;  %v3190_v16 = vld [vmem:[#allocation84_spill] sm:$0xff]  ;;  %v3194_v32 = vld [vmem:[#allocation89_spill] sm:$0xff] }
 0x123   :  { %v924_v15 = vadd.f32 %v923_v60, %v3182_v37  ;;  %v955_v40 = vadd.f32 %v954_v12, %v3184_v3  ;;  %v3191_v29 = vand.u32 2147483647, %v3190_v16  ;;  %v3192_v8 = vld [vmem:[#allocation88_spill] sm:$0xff]  ;;  %v3195_v12 = vand.u32 2147483647, %v3194_v32  ;;  %v3196_v63 = vld [vmem:[#allocation90_spill] sm:$0xff] }
 0x124   :  { %v986_v33 = vadd.f32 %v985_v13, %v3186_v2  ;;  %v1017_v39 = vadd.f32 %v1016_v17, %v3189_v7  ;;  %v3193_v60 = vand.u32 2147483647, %v3192_v8  ;;  %v3197_v13 = vand.u32 2147483647, %v3196_v63  ;;  %v3200_v25 = vld [vmem:[#allocation91_spill] sm:$0xff]  ;;  %v3202_v7 = vld [vmem:[#allocation92_spill] sm:$0xff] }
 0x125   :  { %v1048_v11 = vadd.f32 %v1047_v10, %v3191_v29  ;;  %v956_v3 = vadd.f32 %v955_v40, %v3195_v12  ;;  %v779_v23 = vand.u32 2147483647, %v3198_v36  ;;  %v780_v51 = vand.u32 2147483647, %v3199_v9  ;;  %v3204_v35 = vld [vmem:[#allocation193_spill] sm:$0xff]  ;;  %v3205_v29 = vld [vmem:[#allocation96_spill] sm:$0xff] }
 0x126   :  { %v925_v37 = vadd.f32 %v924_v15, %v3193_v60  ;;  %v987_v2 = vadd.f32 %v986_v33, %v3197_v13  ;;  %v3201_v18 = vand.u32 2147483647, %v3200_v25  ;;  %v3203_v16 = vand.u32 2147483647, %v3202_v7  ;;  %v3207_v60 = vld [vmem:[#allocation97_spill] sm:$0xff]  ;;  %v3209_v12 = vld [vmem:[#allocation98_spill] sm:$0xff] }
 0x127   :  { %v781_v57 = vand.u32 2147483647, %v3204_v35  ;;  %v3206_v15 = vand.u32 2147483647, %v3205_v29  ;;  %v3208_v40 = vand.u32 2147483647, %v3207_v60  ;;  %v876_v36 = vadd.f32 %v875_v45, %v772_v61 }
 0x128   :  { %v1018_v17 = vadd.f32 %v1017_v39, %v3201_v18  ;;  %v1049_v10 = vadd.f32 %v1048_v11, %v3203_v16  ;;  %v3210_v33 = vand.u32 2147483647, %v3209_v12  ;;  %v905_v13 = vadd.f32 %v904_v31, %v757_v0  ;;  %v3211_v9 = vld [vmem:[#allocation99_spill] sm:$0xff]  ;;  %v3213_v18 = vld [vmem:[#allocation100_spill] sm:$0xff]  ;;  %v3215_v16 = vld [vmem:[#allocation194_spill] sm:$0xff] }
 0x129   :  { %v926_v8 = vadd.f32 %v925_v37, %v3206_v15  ;;  %v957_v32 = vadd.f32 %v956_v3, %v3208_v40  ;;  %v3212_v39 = vand.u32 2147483647, %v3211_v9  ;;  %v3214_v11 = vand.u32 2147483647, %v3213_v18  ;;  %v3216_v29 = vld [vmem:[#allocation104_spill] sm:$0xff]  ;;  %v3218_v60 = vld [vmem:[#allocation105_spill] sm:$0xff] }
 0x12a   :  { %v988_v63 = vadd.f32 %v987_v2, %v3210_v33  ;;  %v3217_v37 = vand.u32 2147483647, %v3216_v29  ;;  %v3219_v3 = vand.u32 2147483647, %v3218_v60  ;;  %v3220_v12 = vld [vmem:[#allocation106_spill] sm:$0xff]  ;;  %v3222_v45 = vld [vmem:[#allocation195_spill] sm:$0xff] }
 0x12b   :  { %v1019_v25 = vadd.f32 %v1018_v17, %v3212_v39  ;;  %v1050_v7 = vadd.f32 %v1049_v10, %v3214_v11  ;;  %v3221_v2 = vand.u32 2147483647, %v3220_v12  ;;  %v3224_v33 = vld [vmem:[#allocation107_spill] sm:$0xff]  ;;  %v3226_v39 = vld [vmem:[#allocation108_spill] sm:$0xff]  ;;  %v3231_v60 = vld [vmem:[#allocation113_spill] sm:$0xff] }
 0x12c   :  { %v927_v15 = vadd.f32 %v926_v8, %v3217_v37  ;;  %v958_v40 = vadd.f32 %v957_v32, %v3219_v3  ;;  %v3225_v17 = vand.u32 2147483647, %v3224_v33  ;;  %v3227_v10 = vand.u32 2147483647, %v3226_v39  ;;  %v3229_v29 = vld [vmem:[#allocation112_spill] sm:$0xff]  ;;  %v3233_v12 = vld [vmem:[#allocation114_spill] sm:$0xff] }
 0x12d   :  { %v989_v61 = vadd.f32 %v988_v63, %v3221_v2  ;;  %v3230_v8 = vand.u32 2147483647, %v3229_v29  ;;  %v3232_v32 = vand.u32 2147483647, %v3231_v60  ;;  %v3234_v63 = vand.u32 2147483647, %v3233_v12 }
 0x12e   :  { %v1020_v9 = vadd.f32 %v1019_v25, %v3225_v17  ;;  %v1051_v18 = vadd.f32 %v1050_v7, %v3227_v10  ;;  %v3236_v31 = vand.u32 2147483647, %v3105_v56  ;;  %v3237_v25 = vld [vmem:[#allocation115_spill] sm:$0xff]  ;;  %v3239_v7 = vld [vmem:[#allocation116_spill] sm:$0xff]  ;;  %v788_v56 = vand.u32 2147483647, %v3248_v53 }
 0x12f   :  { %v928_v37 = vadd.f32 %v927_v15, %v3230_v8  ;;  %v959_v3 = vadd.f32 %v958_v40, %v3232_v32  ;;  %v990_v2 = vadd.f32 %v989_v61, %v3234_v63  ;;  %v3238_v17 = vand.u32 2147483647, %v3237_v25  ;;  %v3241_v11 = vld [vmem:[#allocation199_spill] sm:$0xff]  ;;  %v3242_v15 = vld [vmem:[#allocation120_spill] sm:$0xff]  ;;  %v3244_v40 = vld [vmem:[#allocation121_spill] sm:$0xff] }
 0x130   :  { %v906_v33 = vadd.f32 %v905_v13, %v3236_v31  ;;  %v3240_v10 = vand.u32 2147483647, %v3239_v7  ;;  %v787_v29 = vand.u32 2147483647, %v3241_v11  ;;  %v3243_v8 = vand.u32 2147483647, %v3242_v15 }
 0x131   :  { %v1021_v39 = vadd.f32 %v1020_v9, %v3238_v17  ;;  %v3245_v32 = vand.u32 2147483647, %v3244_v40  ;;  %v3246_v61 = vld [vmem:[#allocation122_spill] sm:$0xff]  ;;  %v846_v13 = vadd.f32 %v845_v27, %v779_v23  ;;  %v3249_v31 = vld [vmem:[#allocation123_spill] sm:$0xff]  ;;  %v3251_v17 = vld [vmem:[#allocation124_spill] sm:$0xff] }
 0x132   :  { %v1052_v35 = vadd.f32 %v1051_v18, %v3240_v10  ;;  %v929_v60 = vadd.f32 %v928_v37, %v3243_v8  ;;  %v3247_v63 = vand.u32 2147483647, %v3246_v61  ;;  %v3250_v25 = vand.u32 2147483647, %v3249_v31  ;;  %v3253_v10 = vld [vmem:[#allocation201_spill] sm:$0xff]  ;;  %v3254_v0 = vld [vmem:[#allocation128_spill] sm:$0xff] }
 0x133   :  { %v960_v12 = vadd.f32 %v959_v3, %v3245_v32  ;;  %v3252_v7 = vand.u32 2147483647, %v3251_v17  ;;  %v789_v11 = vand.u32 2147483647, %v3253_v10  ;;  %v3255_v15 = vand.u32 2147483647, %v3254_v0 }
 0x134   :  { %v991_v24 = vadd.f32 %v990_v2, %v3247_v63  ;;  %v1022_v9 = vadd.f32 %v1021_v39, %v3250_v25  ;;  %v3256_v8 = vld [vmem:[#allocation129_spill] sm:$0xff]  ;;  %v3258_v32 = vld [vmem:[#allocation130_spill] sm:$0xff]  ;;  %v877_v63 = vadd.f32 %v876_v36, %v780_v51  ;;  %v3260_v23 = vand.u32 2147483647, %v3161_v47  ;;  %v3261_v53 = vld [vmem:[#allocation131_spill] sm:$0xff] }
 0x135   :  { %v1053_v18 = vadd.f32 %v1052_v35, %v3252_v7  ;;  %v930_v37 = vadd.f32 %v929_v60, %v3255_v15  ;;  %v3257_v40 = vand.u32 2147483647, %v3256_v8  ;;  %v3259_v61 = vand.u32 2147483647, %v3258_v32  ;;  %v3263_v25 = vld [vmem:[#allocation132_spill] sm:$0xff]  ;;  %v3265_v7 = vld [vmem:[#allocation202_spill] sm:$0xff] }
 0x136   :  { %v907_v27 = vadd.f32 %v906_v33, %v3260_v23  ;;  %v3262_v39 = vand.u32 2147483647, %v3261_v53  ;;  %v3264_v35 = vand.u32 2147483647, %v3263_v25  ;;  %v790_v10 = vand.u32 2147483647, %v3265_v7 }
 0x137   :  { %v961_v3 = vadd.f32 %v960_v12, %v3257_v40  ;;  %v992_v2 = vadd.f32 %v991_v24, %v3259_v61  ;;  %v3266_v0 = vld [vmem:[#allocation136_spill] sm:$0xff]  ;;  %v3268_v8 = vld [vmem:[#allocation137_spill] sm:$0xff]  ;;  %v3270_v32 = vld [vmem:[#allocation138_spill] sm:$0xff]  ;;  %v847_v33 = vadd.f32 %v846_v13, %v787_v29 }
 0x138   :  { %v1023_v31 = vadd.f32 %v1022_v9, %v3262_v39  ;;  %v1054_v17 = vadd.f32 %v1053_v18, %v3264_v35  ;;  %v3267_v60 = vand.u32 2147483647, %v3266_v0  ;;  %v3269_v12 = vand.u32 2147483647, %v3268_v8  ;;  %v3272_v36 = vld [vmem:[#allocation207_spill] sm:$0xff]  ;;  %v3275_v53 = vld [vmem:[#allocation140_spill] sm:$0xff] }
 0x139   :  { %v3271_v24 = vand.u32 2147483647, %v3270_v32  ;;  %v795_v47 = vand.u32 2147483647, %v3272_v36  ;;  %v3273_v61 = vld [vmem:[#allocation139_spill] sm:$0xff]  ;;  %v3277_v25 = vld [vmem:[#allocation208_spill] sm:$0xff]  ;;  %v908_v36 = vadd.f32 %v907_v27, %v781_v57 }
 0x13a   :  { %v931_v15 = vadd.f32 %v930_v37, %v3267_v60  ;;  %v962_v40 = vadd.f32 %v961_v3, %v3269_v12  ;;  %v3274_v23 = vand.u32 2147483647, %v3273_v61  ;;  %v3276_v39 = vand.u32 2147483647, %v3275_v53  ;;  %v3279_v60 = vld [vmem:[#allocation145_spill] sm:$0xff]  ;;  %v3281_v12 = vld [vmem:[#allocation146_spill] sm:$0xff] }
 0x13b   :  { %v993_v51 = vadd.f32 %v992_v2, %v3271_v24  ;;  %v796_v35 = vand.u32 2147483647, %v3277_v25  ;;  %v3278_v0 = vand.u32 2147483647, %v3026_v4  ;;  %v3280_v8 = vand.u32 2147483647, %v3279_v60 }
 0x13c   :  { %v1024_v9 = vadd.f32 %v1023_v31, %v3274_v23  ;;  %v1055_v18 = vadd.f32 %v1054_v17, %v3276_v39  ;;  %v3282_v32 = vand.u32 2147483647, %v3281_v12  ;;  %v878_v24 = vadd.f32 %v877_v63, %v788_v56  ;;  %v3283_v29 = vld [vmem:[#allocation147_spill] sm:$0xff]  ;;  %v3285_v31 = vld [vmem:[#allocation148_spill] sm:$0xff]  ;;  %v3287_v17 = vld [vmem:[#allocation209_spill] sm:$0xff] }
 0x13d   :  { %v932_v37 = vadd.f32 %v931_v15, %v3278_v0  ;;  %v963_v3 = vadd.f32 %v962_v40, %v3280_v8  ;;  %v3284_v13 = vand.u32 2147483647, %v3283_v29  ;;  %v3286_v23 = vand.u32 2147483647, %v3285_v31  ;;  %v3295_v12 = vld [vmem:[#allocation216_spill] sm:$0xff]  ;;  %v3297_v29 = vld [vmem:[#allocation159_spill] sm:$0xff] }
 0x13e   :  { %v994_v2 = vadd.f32 %v993_v51, %v3282_v32  ;;  %v797_v39 = vand.u32 2147483647, %v3287_v17  ;;  %v3288_v25 = vand.u32 2147483647, %v3033_v50  ;;  %v3289_v15 = vand.u32 2147483647, %v3034_v48 }
 0x13f   :  { %v1025_v61 = vadd.f32 %v1024_v9, %v3284_v13  ;;  %v1056_v53 = vadd.f32 %v1055_v18, %v3286_v23  ;;  %v3290_v40 = vand.u32 2147483647, %v3035_v55  ;;  %v3291_v51 = vld [vmem:[#allocation215_spill] sm:$0xff]  ;;  %v848_v57 = vadd.f32 %v847_v33, %v795_v47  ;;  %v3293_v9 = vld [vmem:[#allocation156_spill] sm:$0xff] }
 0x140   :  { %v933_v4 = vadd.f32 %v932_v37, %v3288_v25  ;;  %v964_v0 = vadd.f32 %v963_v3, %v3289_v15  ;;  %v803_v56 = vand.u32 2147483647, %v3291_v51  ;;  %v3292_v63 = vand.u32 2147483647, %v3036_v1  ;;  %v3299_v13 = vld [vmem:[#allocation160_spill] sm:$0xff] }
 0x141   :  { %v995_v60 = vadd.f32 %v994_v2, %v3290_v40  ;;  %v3294_v8 = vand.u32 2147483647, %v3293_v9  ;;  %v804_v32 = vand.u32 2147483647, %v3295_v12  ;;  %v3296_v50 = vand.u32 2147483647, %v3039_v58 }
 0x142   :  { %v1026_v27 = vadd.f32 %v1025_v61, %v3292_v63  ;;  %v3298_v48 = vand.u32 2147483647, %v3297_v29  ;;  %v3300_v55 = vand.u32 2147483647, %v3299_v13  ;;  %v879_v31 = vadd.f32 %v878_v24, %v796_v35  ;;  %v3320_v13 = vld [vmem:[#allocation206_spill] sm:$0xff] }
 0x143   :  { %v1057_v18 = vadd.f32 %v1056_v53, %v3294_v8  ;;  %v934_v37 = vadd.f32 %v933_v4, %v3296_v50  ;;  %v909_v23 = vadd.f32 %v908_v36, %v789_v11  ;;  %v3301_v47 = vand.u32 2147483647, %v1827_v54  ;;  %v3303_v53 = vld [vmem:[#allocation203_spill] sm:$0xff]  ;;  %v3308_v11 = vld [vmem:[#allocation217_spill] sm:$0xff] }
 0x144   :  { %v965_v3 = vadd.f32 %v964_v0, %v3298_v48  ;;  %v996_v2 = vadd.f32 %v995_v60, %v3300_v55  ;;  %v3302_v33 = vand.u32 2147483647, %v3041_v49  ;;  %v791_v17 = vand.u32 2147483647, %v3303_v53  ;;  %v3307_v60 = vld [vmem:[#allocation204_spill] sm:$0xff] }
 0x145   :  { %v1027_v1 = vadd.f32 %v1026_v27, %v3301_v47  ;;  %v3304_v25 = vand.u32 2147483647, %v3043_v19  ;;  %v3305_v4 = vand.u32 2147483647, %v3044_v46  ;;  %v3306_v0 = vand.u32 2147483647, %v1841_v14 }
 0x146   :  { %v1058_v61 = vadd.f32 %v1057_v18, %v3302_v33  ;;  %v792_v35 = vand.u32 2147483647, %v3307_v60  ;;  %v805_v24 = vand.u32 2147483647, %v3308_v11  ;;  %v3309_v54 = vand.u32 2147483647, %v3045_v43 }
 0x147   :  { %v935_v58 = vadd.f32 %v934_v37, %v3304_v25  ;;  %v966_v15 = vadd.f32 %v965_v3, %v3305_v4  ;;  %v997_v40 = vadd.f32 %v996_v2, %v3306_v0  ;;  %v3310_v49 = vand.u32 2147483647, %v3052_v20  ;;  %v3316_v20 = vld [vmem:[#allocation205_spill] sm:$0xff]  ;;  %v3333_v11 = vld [vmem:[#allocation196_spill] sm:$0xff] }
 0x148   :  { %v1028_v36 = vadd.f32 %v1027_v1, %v3309_v54  ;;  %v849_v63 = vadd.f32 %v848_v57, %v803_v56  ;;  %v3311_v19 = vand.u32 2147483647, %v3072_v44  ;;  %v3312_v46 = vand.u32 2147483647, %v3076_v41 }
 0x149   :  { %v1059_v51 = vadd.f32 %v1058_v61, %v3310_v49  ;;  %v3313_v14 = vand.u32 2147483647, %v3077_v52  ;;  %v880_v18 = vadd.f32 %v879_v31, %v804_v32  ;;  %v910_v12 = vadd.f32 %v909_v23, %v797_v39  ;;  %v3321_v39 = vld [vmem:[#allocation210_spill] sm:$0xff]  ;;  %v3324_v23 = vld [vmem:[#allocation211_spill] sm:$0xff] }
 0x14a   :  { %v936_v27 = vadd.f32 %v935_v58, %v3311_v19  ;;  %v967_v9 = vadd.f32 %v966_v15, %v3312_v46  ;;  %v3314_v50 = vand.u32 2147483647, %v3080_v21  ;;  %v3315_v43 = vand.u32 2147483647, %v3086_v26  ;;  %v3330_v15 = vld [vmem:[#allocation212_spill] sm:$0xff]  ;;  %v3336_v49 = vld [vmem:[#allocation218_spill] sm:$0xff] }
 0x14b   :  { %v998_v8 = vadd.f32 %v997_v40, %v3313_v14  ;;  %v793_v48 = vand.u32 2147483647, %v3316_v20  ;;  %v3317_v56 = vand.u32 2147483647, %v3112_v62  ;;  %v3318_v57 = vand.u32 2147483647, %v3124_v59 }
 0x14c   :  { %v1029_v37 = vadd.f32 %v1028_v36, %v3314_v50  ;;  %v1060_v29 = vadd.f32 %v1059_v51, %v3315_v43  ;;  %v3319_v3 = vand.u32 2147483647, %v3125_v5  ;;  %v794_v32 = vand.u32 2147483647, %v3320_v13  ;;  %v3335_v36 = vld [vmem:[#allocation213_spill] sm:$0xff]  ;;  %v3343_v50 = vld [vmem:[#allocation220_spill] sm:$0xff] }
 0x14d   :  { %v937_v44 = vadd.f32 %v936_v27, %v3317_v56  ;;  %v968_v41 = vadd.f32 %v967_v9, %v3318_v57  ;;  %v798_v55 = vand.u32 2147483647, %v3321_v39  ;;  %v3322_v21 = vand.u32 2147483647, %v3130_v34  ;;  %v3337_v51 = vld [vmem:[#allocation197_spill] sm:$0xff]  ;;  %v3339_v27 = vld [vmem:[#allocation198_spill] sm:$0xff] }
 0x14e   :  { %v999_v52 = vadd.f32 %v998_v8, %v3319_v3  ;;  %v3323_v26 = vand.u32 2147483647, %v3142_v22  ;;  %v799_v47 = vand.u32 2147483647, %v3324_v23  ;;  %v3325_v62 = vand.u32 2147483647, %v3167_v6 }
 0x14f   :  { %v1030_v2 = vadd.f32 %v1029_v37, %v3322_v21  ;;  %v3326_v59 = vand.u32 2147483647, %v3174_v30  ;;  %v3327_v5 = vand.u32 2147483647, %v3175_v28  ;;  %v911_v53 = vadd.f32 %v910_v12, %v805_v24  ;;  %v3341_v9 = vld [vmem:[#allocation219_spill] sm:$0xff]  ;;  %v3345_v21 = vld [vmem:[#allocation222_spill] sm:$0xff] }
 0x150   :  { %v1061_v31 = vadd.f32 %v1060_v29, %v3323_v26  ;;  %v938_v1 = vadd.f32 %v937_v44, %v3325_v62  ;;  %v3328_v25 = vand.u32 2147483647, %v3180_v38  ;;  %v3329_v34 = vand.u32 2147483647, %v3187_v42 }
 0x151   :  { %v969_v33 = vadd.f32 %v968_v41, %v3326_v59  ;;  %v1000_v61 = vadd.f32 %v999_v52, %v3327_v5  ;;  %v1094_v22 = vadd.f32 %v880_v18, %v849_v63  ;;  %v800_v0 = vand.u32 2147483647, %v3330_v15  ;;  %v3342_v18 = vld [vmem:[#allocation214_spill] sm:$0xff]  ;;  %v3344_v41 = vld [vmem:[#allocation221_spill] sm:$0xff] }
 0x152   :  { %v1031_v58 = vadd.f32 %v1030_v2, %v3328_v25  ;;  %v1062_v4 = vadd.f32 %v1061_v31, %v3329_v34  ;;  %v3331_v40 = vand.u32 2147483647, %v3215_v16  ;;  %v3332_v60 = vand.u32 2147483647, %v3222_v45 }
 0x153   :  { %v3334_v54 = vand.u32 2147483647, %v3333_v11  ;;  %v801_v24 = vand.u32 2147483647, %v3335_v36  ;;  %v806_v38 = vand.u32 2147483647, %v3336_v49  ;;  %v1095_v29 = vadd.f32 %v1094_v22, %v911_v53 }
 0x154   :  { %v939_v6 = vadd.f32 %v938_v1, %v3331_v40  ;;  %v970_v30 = vadd.f32 %v969_v33, %v3332_v60  ;;  %v3338_v19 = vand.u32 2147483647, %v3337_v51  ;;  %v3340_v63 = vand.u32 2147483647, %v3339_v27 }
 0x155   :  { %v1001_v28 = vadd.f32 %v1000_v61, %v3334_v54  ;;  %v807_v14 = vand.u32 2147483647, %v3341_v9  ;;  %v802_v12 = vand.u32 2147483647, %v3342_v18  ;;  %v808_v37 = vand.u32 2147483647, %v3343_v50 }
 0x156   :  { %v1032_v42 = vadd.f32 %v1031_v58, %v3338_v19  ;;  %v1063_v46 = vadd.f32 %v1062_v4, %v3340_v63  ;;  %v940_v16 = vadd.f32 %v939_v6, %v790_v10  ;;  %v971_v45 = vadd.f32 %v970_v30, %v791_v17 }
 0x157   :  { %v1002_v8 = vadd.f32 %v1001_v28, %v792_v35  ;;  %v809_v3 = vand.u32 2147483647, %v3344_v41  ;;  %v810_v7 = vand.u32 2147483647, %v3345_v21 }
 0x158   :  { %v1033_v43 = vadd.f32 %v1032_v42, %v793_v48  ;;  %v941_v20 = vadd.f32 %v940_v16, %v798_v55  ;;  %v972_v56 = vadd.f32 %v971_v45, %v799_v47  ;;  %v1064_v57 = vadd.f32 %v1063_v46, %v794_v32 }
 0x159   :  { %v1003_v44 = vadd.f32 %v1002_v8, %v800_v0 }
 0x15a   :  { %v942_v52 = vadd.f32 %v941_v20, %v806_v38  ;;  %v973_v13 = vadd.f32 %v972_v56, %v807_v14  ;;  %v1034_v39 = vadd.f32 %v1033_v43, %v801_v24  ;;  %v1065_v17 = vadd.f32 %v1064_v57, %v802_v12 }
 0x15b   :  { %v1004_v10 = vadd.f32 %v1003_v44, %v808_v37 }
 0x15c   :  { %v1096_v35 = vadd.f32 %v1095_v29, %v942_v52  ;;  %v1035_v2 = vadd.f32 %v1034_v39, %v809_v3  ;;  %v1066_v31 = vadd.f32 %v1065_v17, %v810_v7 }
 0x15e   :  { %v1097_v26 = vadd.f32 %v1096_v35, %v973_v13 }
 0x160   :  { %v1098_v23 = vadd.f32 %v1097_v26, %v1004_v10 }
 0x162   :  { %v1099_v48 = vadd.f32 %v1098_v23, %v1035_v2 }
 0x164   :  { %v1100_v62 = vadd.f32 %v1099_v48, %v1066_v31 }
 0x166   :  { %1101 = vadd.xlane.f32.xlu0 %v1100_v62 }
 0x1d9   :  { %v1102_v55 = vpop.xlane.xlu0 %1101 }
 0x1da   :  { %v1103_v47 = vrot.slane %v1102_v55, 4 }
 0x1dc   :  { %v1104_v32 = vadd.f32 %v1103_v47, %v1102_v55 }
 0x1de   :  { %v1105_v1 = vrot.slane %v1104_v32, 2 }
 0x1e0   :  { %v1106_v59 = vadd.f32 %v1105_v1, %v1104_v32 }
 0x1e2   :  { %v1107_v33 = vrot.slane %v1106_v59, 1 }
 0x1e4   :  { %v1108_v5 = vadd.f32 %v1107_v33, %v1106_v59 }
 0x1e6   :  { %1384 = vpush %v1108_v5 }
 0x217   :  { %s1385_s15 = spop %1384 }
 0x218   :  { %1111 = sst [smem:[#allocation6]] %s1385_s15 }
 0x219   :  { %1120 = dma.smem_to_hbm %s1433_s16, 16, %s1118_s14, [#allocation5]  }
 0x21a   :  { %1428 = dma.done.wait [#allocation5], 16  }
 0x21b   :  { %1429 = vsyncadd [#allocation5], 4294967280 }
 0x21c   :  { %1125 = sfence }
 0x21d   :  { %1126 = vsyncpa [#allocation4], 1 }
 0x21e   :  { %1127 = vsyncpa [#allocation5], 1 }

</bundles_post_ra>
